<compile_context>
chip_gen: v6e
topology: v6e:2x2x1
jax: 0.10.0
libtpu: 0.0.40
codegen_flags: <defaults>
</compile_context>

<pallas_src>
import functools

import jax
import jax.numpy as jnp
from jax.experimental import pallas as pl
from jax.experimental.pallas import tpu as pltpu


def _mlp_kernel(x_ref, wgu_ref, wd_ref, o_ref, acc_ref, *, ti):
    k = pl.program_id(1)

    @pl.when(k == 0)
    def _():
        acc_ref[...] = jnp.zeros_like(acc_ref)

    x = x_ref[...]                                                     # [tm, H] native dtype

    # Fused gate/up projection for this intermediate tile (bf16-in, f32-acc).
    gu = jnp.dot(x, wgu_ref[...], preferred_element_type=jnp.float32)  # [tm, 2*ti] f32
    gate = gu[:, :ti]                                                  # lane-aligned slice (free)
    up = gu[:, ti:]

    # SiLU(gate) * up in f32 (VPU/EUP), then cast back for the bf16 MXU path.
    h = (gate * jax.nn.sigmoid(gate) * up).astype(x_ref.dtype)         # [tm, ti]

    # Partial down-projection, accumulated in f32 across intermediate tiles.
    acc_ref[...] += jnp.dot(h, wd_ref[...], preferred_element_type=jnp.float32)  # [tm, H]

    @pl.when(k == pl.num_programs(1) - 1)
    def _():
        o_ref[...] = acc_ref[...].astype(o_ref.dtype)


def _default_tiles(T, I):
    """Per-generation tile defaults (tm drives arithmetic intensity, ti drives VMEM)."""
    kind = ""
    try:
        kind = jax.devices()[0].device_kind.lower()
    except Exception:  # pragma: no cover - defensive, device query only
        pass
    if "v5" in kind:
        tm, ti = 256, 1024
    elif "v7" in kind:
        tm, ti = 512, 256
    elif "v6" in kind:
        tm, ti = 512, 512
    else:
        tm, ti = 512, 512
    return tm, ti


def _pick_ti(ti, I):
    """Largest ti' <= ti that is a multiple of 128 and divides I (fallback: I)."""
    ti = min(ti, I)
    if I % ti == 0 and (ti % 128 == 0 or ti == I):
        return ti
    cand = (ti // 128) * 128
    while cand >= 128:
        if I % cand == 0:
            return cand
        cand -= 128
    return I


def _pick_tm(tm, T):
    tm = min(tm, T)
    if tm >= T:
        return T
    # bf16 sublane packing wants multiples of 16.
    tm = max(16, (tm // 16) * 16)
    return tm


def llama4_text_mlp(x, w_gate, w_up, w_down, *, tm=None, ti=None,
                    vmem_limit_bytes=None):
    """x: [T, H]; w_gate/w_up: [H, I]; w_down: [I, H] -> [T, H]."""
    T, H = x.shape
    I = w_gate.shape[1]
    assert w_gate.shape == (H, I)
    assert w_up.shape == (H, I)
    assert w_down.shape == (I, H)

    dtm, dti = _default_tiles(T, I)
    if tm is None:
        tm = dtm
    if ti is None:
        ti = dti
    tm = _pick_tm(tm, T)
    ti = _pick_ti(ti, I)

    # (8, 128) layout constraints on streamed blocks.
    assert H % 128 == 0, "hidden_size must be a multiple of 128"
    assert I % ti == 0 and (ti % 128 == 0 or ti == I), \
        "ti must divide I and be a multiple of 128 (or equal I)"
    assert tm == T or tm % 16 == 0, "tm must be a multiple of 16 (bf16 packing) or equal T"

    nk = I // ti
    grid = (pl.cdiv(T, tm), nk)

    # Fuse + interleave gate/up at ti granularity so one (H, 2*ti) block per
    # k-step contains [gate_tile_k | up_tile_k].
    w_gu = jnp.concatenate(
        [w_gate.reshape(H, nk, ti), w_up.reshape(H, nk, ti)], axis=2
    ).reshape(H, 2 * I)

    x_bytes = x.dtype.itemsize
    w_bytes = w_gu.dtype.itemsize
    out_bytes = x_bytes

    if vmem_limit_bytes is None:
        vmem_needed = (
            2 * (H * 2 * ti + ti * H) * w_bytes      # double-buffered weight tiles
            + 2 * tm * H * x_bytes                   # x tile double buffer
            + 2 * tm * H * out_bytes                 # out tile double buffer
            + tm * H * 4                             # f32 accumulator
            + tm * 2 * ti * 4                        # gu f32 intermediate
            + tm * ti * 4 + tm * ti * x_bytes        # silu/h intermediates
        )
        vmem_limit_bytes = min(int(vmem_needed * 1.25) + (4 << 20), 128 << 20)

    n_tok_tiles = pl.cdiv(T, tm)
    cost = pl.CostEstimate(
        flops=6 * T * H * I,                          # 2*T*H*I per matmul, 3 matmuls
        transcendentals=T * I,                        # sigmoid
        bytes_accessed=(
            x.size * x_bytes
            + T * H * out_bytes
            # weights are re-streamed once per token tile
            + n_tok_tiles * (w_gu.size * w_bytes
                             + w_down.size * w_down.dtype.itemsize)
        ),
    )

    kernel = functools.partial(_mlp_kernel, ti=ti)

    return pl.pallas_call(
        kernel,
        out_shape=jax.ShapeDtypeStruct((T, H), x.dtype),
        grid=grid,
        in_specs=[
            pl.BlockSpec((tm, H), lambda i, k: (i, 0)),        # x tile (constant over k)
            pl.BlockSpec((H, 2 * ti), lambda i, k: (0, k)),    # fused gate/up tile (streams over k)
            pl.BlockSpec((ti, H), lambda i, k: (k, 0)),        # down weight tile (streams over k)
        ],
        out_specs=pl.BlockSpec((tm, H), lambda i, k: (i, 0)),
        scratch_shapes=[pltpu.VMEM((tm, H), jnp.float32)],     # f32 accumulator
        compiler_params=pltpu.CompilerParams(
            dimension_semantics=("parallel", "arbitrary"),
            vmem_limit_bytes=vmem_limit_bytes,
        ),
        cost_estimate=cost,
    )(x, w_gu, w_down)


def llama4_text_mlp_ref(x, w_gate, w_up, w_down):
    """Pure-JAX reference with the same dtype handling as the kernel."""
    gate = jnp.dot(x, w_gate, preferred_element_type=jnp.float32)
    up = jnp.dot(x, w_up, preferred_element_type=jnp.float32)
    h = (gate * jax.nn.sigmoid(gate) * up).astype(x.dtype)
    return jnp.dot(h, w_down, preferred_element_type=jnp.float32).astype(x.dtype)


if __name__ == "__main__":
    # Small shapes consistent with the module; chosen so the grid actually
    # exercises both the token tiling and the intermediate reduction tiling.
    T, H, I = 256, 256, 512
    tm, ti = 128, 256          # grid = (2, 2)

    key = jax.random.PRNGKey(0)
    kx, kg, ku, kd = jax.random.split(key, 4)

    dtype = jnp.bfloat16
    x = jax.random.normal(kx, (T, H), dtype=jnp.float32).astype(dtype)

    # PyTorch weight layouts: gate_proj.weight [I, H], up_proj.weight [I, H],
    # down_proj.weight [H, I].
    w_gate_pt = (jax.random.normal(kg, (I, H), dtype=jnp.float32) * 0.02).astype(dtype)
    w_up_pt = (jax.random.normal(ku, (I, H), dtype=jnp.float32) * 0.02).astype(dtype)
    w_down_pt = (jax.random.normal(kd, (H, I), dtype=jnp.float32) * 0.02).astype(dtype)

    # Glue: transpose to matmul-friendly kernel layouts.
    w_gate = w_gate_pt.T      # [H, I]
    w_up = w_up_pt.T          # [H, I]
    w_down = w_down_pt.T      # [I, H]

    out = llama4_text_mlp(x, w_gate, w_up, w_down, tm=tm, ti=ti)
    out = jax.block_until_ready(out)

    ref = llama4_text_mlp_ref(x, w_gate, w_up, w_down)
    assert out.shape == (T, H)
    err = jnp.max(jnp.abs(out.astype(jnp.float32) - ref.astype(jnp.float32)))
    assert float(err) <= 5e-3, f"mismatch vs reference: max abs err {float(err)}"

    print("KERNEL_OK")
</pallas_src>

<mosaic_0001>
module attributes {stable_mosaic.version = 11 : i64} {
  func.func @_mlp_kernel(%arg0: i32, %arg1: i32, %arg2: memref<128x256xbf16, #tpu.memory_space<vmem>>, %arg3: memref<256x512xbf16, #tpu.memory_space<vmem>>, %arg4: memref<256x256xbf16, #tpu.memory_space<vmem>>, %arg5: memref<128x256xbf16, #tpu.memory_space<vmem>>, %arg6: memref<128x256xf32, #tpu.memory_space<vmem>>) attributes {dimension_semantics = [#tpu.dimension_semantics<parallel>, #tpu.dimension_semantics<arbitrary>], iteration_bounds = array<i64: 2, 2>, scalar_prefetch = 0 : i64, scratch_operands = 1 : i64, tpu.core_type = #tpu.core_type<tc>, window_params = [{transform_indices = @transform_0, window_bounds = array<i64: 128, 256>}, {transform_indices = @transform_1, window_bounds = array<i64: 256, 512>}, {transform_indices = @transform_2, window_bounds = array<i64: 256, 256>}, {transform_indices = @transform_3, window_bounds = array<i64: 128, 256>}]} {
    %c0_i32 = arith.constant 0 : i32
    %0 = arith.cmpi eq, %arg1, %c0_i32 : i32
    %1 = arith.extui %0 : i1 to i32
    %c0_i32_0 = arith.constant 0 : i32
    %2 = arith.cmpi ne, %1, %c0_i32_0 : i32
    scf.if %2 {
      %cst_13 = arith.constant 0.000000e+00 : f32
      %24 = vector.broadcast %cst_13 : f32 to vector<128x256xf32>
      %c0_14 = arith.constant 0 : index
      %c0_15 = arith.constant 0 : index
      %25 = vector.load %arg6[%c0_14, %c0_15] : memref<128x256xf32, #tpu.memory_space<vmem>>, vector<128x256xf32>
      tpu.vector_store %arg6[%c0_14, %c0_15], %24 {strides = array<i32>} : memref<128x256xf32, #tpu.memory_space<vmem>>, vector<128x256xf32>,
    } else {
    }
    %c0 = arith.constant 0 : index
    %c0_1 = arith.constant 0 : index
    %3 = vector.load %arg2[%c0, %c0_1] : memref<128x256xbf16, #tpu.memory_space<vmem>>, vector<128x256xbf16>
    %c0_2 = arith.constant 0 : index
    %c0_3 = arith.constant 0 : index
    %4 = vector.load %arg3[%c0_2, %c0_3] : memref<256x512xbf16, #tpu.memory_space<vmem>>, vector<256x512xbf16>
    %cst = arith.constant dense<0.000000e+00> : vector<128x512xf32>
    %5 = tpu.matmul %3, %4, %cst {dimension_numbers = #tpu.dot_dimension_numbers<[1], [0], [0], [1], [0, 0, 1, 1], [], []>} : vector<128x256xbf16>, vector<256x512xbf16>, vector<128x512xf32> -> vector<128x512xf32>
    %6 = vector.extract_strided_slice %5 {offsets = [0, 0], sizes = [128, 256], strides = [1, 1]} : vector<128x512xf32> to vector<128x256xf32>
    %7 = vector.extract_strided_slice %5 {offsets = [0, 256], sizes = [128, 256], strides = [1, 1]} : vector<128x512xf32> to vector<128x256xf32>
    %8 = arith.negf %6 : vector<128x256xf32>
    %9 = math.exp %8 : vector<128x256xf32>
    %cst_4 = arith.constant 1.000000e+00 : f32
    %10 = vector.broadcast %cst_4 : f32 to vector<128x256xf32>
    %11 = arith.addf %10, %9 : vector<128x256xf32>
    %12 = arith.divf %10, %11 : vector<128x256xf32>
    %13 = arith.mulf %6, %12 : vector<128x256xf32>
    %14 = arith.mulf %13, %7 : vector<128x256xf32>
    %15 = arith.truncf %14 : vector<128x256xf32> to vector<128x256xbf16>
    %c0_5 = arith.constant 0 : index
    %c0_6 = arith.constant 0 : index
    %16 = vector.load %arg6[%c0_5, %c0_6] : memref<128x256xf32, #tpu.memory_space<vmem>>, vector<128x256xf32>
    %c0_7 = arith.constant 0 : index
    %c0_8 = arith.constant 0 : index
    %17 = vector.load %arg4[%c0_7, %c0_8] : memref<256x256xbf16, #tpu.memory_space<vmem>>, vector<256x256xbf16>
    %cst_9 = arith.constant dense<0.000000e+00> : vector<128x256xf32>
    %18 = tpu.matmul %15, %17, %cst_9 {dimension_numbers = #tpu.dot_dimension_numbers<[1], [0], [0], [1], [0, 0, 1, 1], [], []>} : vector<128x256xbf16>, vector<256x256xbf16>, vector<128x256xf32> -> vector<128x256xf32>
    %19 = arith.addf %16, %18 : vector<128x256xf32>
    %c0_10 = arith.constant 0 : index
    %c0_11 = arith.constant 0 : index
    %20 = vector.load %arg6[%c0_10, %c0_11] : memref<128x256xf32, #tpu.memory_space<vmem>>, vector<128x256xf32>
    tpu.vector_store %arg6[%c0_10, %c0_11], %19 {strides = array<i32>} : memref<128x256xf32, #tpu.memory_space<vmem>>, vector<128x256xf32>,
    %c1_i32 = arith.constant 1 : i32
    %21 = arith.cmpi eq, %arg1, %c1_i32 : i32
    %22 = arith.extui %21 : i1 to i32
    %c0_i32_12 = arith.constant 0 : i32
    %23 = arith.cmpi ne, %22, %c0_i32_12 : i32
    scf.if %23 {
      %c0_13 = arith.constant 0 : index
      %c0_14 = arith.constant 0 : index
      %24 = vector.load %arg6[%c0_13, %c0_14] : memref<128x256xf32, #tpu.memory_space<vmem>>, vector<128x256xf32>
      %25 = arith.truncf %24 : vector<128x256xf32> to vector<128x256xbf16>
      %c0_15 = arith.constant 0 : index
      %c0_16 = arith.constant 0 : index
      %26 = vector.load %arg5[%c0_15, %c0_16] : memref<128x256xbf16, #tpu.memory_space<vmem>>, vector<128x256xbf16>
      tpu.vector_store %arg5[%c0_15, %c0_16], %25 {strides = array<i32>} : memref<128x256xbf16, #tpu.memory_space<vmem>>, vector<128x256xbf16>,
    } else {
    }
    return
  }
  func.func @transform_0(%arg0: i32, %arg1: i32) -> (i32, i32) {
    %c0_i32 = arith.constant 0 : i32
    %c0_i32_0 = arith.constant 0 : i32
    return %arg0, %c0_i32 : i32, i32
  }
  func.func @transform_1(%arg0: i32, %arg1: i32) -> (i32, i32) {
    %c0_i32 = arith.constant 0 : i32
    %c0_i32_0 = arith.constant 0 : i32
    return %c0_i32, %arg1 : i32, i32
  }
  func.func @transform_2(%arg0: i32, %arg1: i32) -> (i32, i32) {
    %c0_i32 = arith.constant 0 : i32
    %c0_i32_0 = arith.constant 0 : i32
    return %arg1, %c0_i32 : i32, i32
  }
  func.func @transform_3(%arg0: i32, %arg1: i32) -> (i32, i32) {
    %c0_i32 = arith.constant 0 : i32
    %c0_i32_0 = arith.constant 0 : i32
    return %arg0, %c0_i32 : i32, i32
  }
}

</mosaic_0001>

<bundles_post_ra>
// kernel: tpu_custom_call.1
= control target key start
LH: loop header
LB: loop body
LE: loop exit
PB: predicated region body
PF: predicated region fallthrough
CT: control target
= control target key end

     0   :  { %s3509_s0 = inlined_call_operand.hbm [shape: bf16[256,256], index: 0, kind: input, shape index: {}]   ;;  %s3510_s1 = inlined_call_operand.hbm [shape: bf16[256,1024], index: 1, kind: input, shape index: {}]   ;;  %s3511_s2 = inlined_call_operand.hbm [shape: bf16[512,256], index: 2, kind: input, shape index: {}]   ;;  %s3512_s3 = inlined_call_operand.hbm [shape: bf16[256,256], index: 3, kind: output, shape index: {}]  }
   0x1   :  { %3525 = sst [smem:[#allocation22_spill]] %s3509_s0 }
   0x2   :  { %3526 = sst [smem:[#allocation23_spill]] %s3510_s1 }
   0x3   :  { %3527 = sst [smem:[#allocation24_spill]] %s3512_s3 }
   0x4   :  { %8 = vsyncpa [#allocation4], 0 }
   0x5   :  { %10 = vsyncpa [#allocation4 + $0x1], 0 }
   0x6   :  { %11 = vsyncpa [#allocation7], 0 }
   0x7   :  { %13 = vsyncpa [#allocation7 + $0x1], 0 }
   0x8   :  { %14 = vsyncpa [#allocation5], 0 }
   0x9   :  { %16 = vsyncpa [#allocation5 + $0x1], 0  ;;  %s2890_s12 = smov 0   ;;  %s2892_s13 = smov 0  }
   0xa   :  { %s2894_s14 = smov 0   ;;  %s2896_s15 = smov 0  }
   0xb   :  { %s2898_s16 = smov 0   ;;  %s2900_s17 = smov 0  }
   0xc   :  { %s2902_s18 = smov 0   ;;  %s2904_s19 = smov 0  }
   0xd   :  { %s2906_s20 = smov 0   ;;  %s2908_s21 = smov 0  }
   0xe   :  { %s2910_s22 = smov 0  }
   0xf LB: > { %3528 = sst [smem:[#allocation13_spill]] %s2824_s14  ;;  %s31_s23 = sadd.s32 1, %s2848_s20  ;;  %s2856_s22 = sphi %s2910_s22, %s22_s22   ;;  %s2852_s21 = sphi %s2908_s21, %s3561_s21   ;;  %s2848_s20 = sphi %s2906_s20, %s3567_s20   ;;  %s2844_s19 = sphi %s2904_s19, %s3559_s19   ;;  %s2840_s18 = sphi %s2902_s18, %s3566_s18   ;;  %s2836_s17 = sphi %s2900_s17, %s3558_s17   ;;  %s2832_s16 = sphi %s2898_s16, %s3565_s16   ;;  %s2828_s15 = sphi %s2896_s15, %s3564_s15   ;;  %s2824_s14 = sphi %s2894_s14, %s3556_s14   ;;  %s2820_s13 = sphi %s2892_s13, %s3563_s13   ;;  %s2816_s12 = sphi %s2890_s12, %s3562_s12  }
  0x10   : > { %3529 = sst [smem:[#allocation14_spill]] %s2836_s17  ;;  %p49_p0 = scmp.eq.s32.totalorder %s2856_s22, 0 }
  0x11   : > { %3530 = sst [smem:[#allocation15_spill]] %s2852_s21  ;;  %p2947_p1 = scmp.ge.s32.totalorder %s31_s23, 2 }
  0x12   : > { %s67_s25 = sadd.s32 1, %s2824_s14  ;;  %p74_p2 = scmp.ne.s32.totalorder %s2824_s14, %s2820_s13 }
  0x13   : > { %p80_p3 = scmp.ne.s32.totalorder %s2820_s13, %s2816_s12  ;;  %s3569_s23 = smov (%p2947_p1, %s31_s23), 0 }
  0x14   : > { %3532 = sst [smem:[#allocation16_spill]] %s3569_s23  ;;  %p76_p4 = por %p74_p2, %p49_p0 }
  0x15   : > { %s64_s26 = ssub.s32 %s2848_s20, %s3569_s23  ;;  %p3515_p5 = scmp.lt.s32.totalorder %s2856_s22, 4 }
  0x16   : > { %p65_p6 = scmp.eq.s32.totalorder %s64_s26, 0  ;;  %s178_s27 = sand.u32 1, %s2856_s22  }
  0x17   : > { %s3514_s28 = sand.u32 1, %s2824_s14   ;;  %s2179_s4 = sshll.u32 %s2848_s20, 8 }
  0x18   : > { %s2968_s29 = scalar_select %p65_p6, %s2824_s14, %s67_s25  }
  0x19   : > { %s1997_s30 = sshll.u32 %s3514_s28, 9  ;;  %s3534_s1 = sld [smem:[#allocation23_spill]] }
  0x1a   : > { %3533 = sst [smem:[#allocation17_spill]] %s2968_s29  ;;  %s182_s8 = scalar_lea.vmem [#allocation6], %s1997_s30 }
  0x1b   : > { %s189_s9 = sshll.u32 %s182_s8, 4  ;;  %p2978_p7 = pnand %p3515_p5, %p76_p4  ;;  %s190_s9 = int_to_ptr.vmem [resolvable:$true] %s189_s9 }
  0x1c   : > { %p2004_p8 = scmp.ge.s32.totalorder %s2856_s22, 1  ;;  %s2983_s11 = scalar_lea.sflag [#allocation7], %s178_s27 }
  0x1d   : > { %p3513_p9 = pneg %p2978_p7  ;;  %s2661_s25 = scalar_lea.vmem %s190_s9, 8192 }
  0x1e   : > { %p2662_p10 = scmp.ne.s32.totalorder %s190_s9, %s2661_s25  ;;  %s2858_s26 = smov [#allocation6]  }
  0x1f   : > { %s188_s7 = scalar_lea.hbm %s3534_s1, %s2179_s4  ;;  %s2666_s30 = sshll.u32 %s2858_s26, 4  ;;  %s2667_s30 = int_to_ptr.vmem [resolvable:$false] %s2666_s30 }
  0x20   : > { %p2664_p11 = pnand %p2662_p10, %p3513_p9  ;;  %s2668_s4 = scalar_lea.vmem %s2667_s30, 16384 }
  0x21   : > { %p2669_p13 = scmp.lt.s32.totalorder %s190_s9, %s2667_s30  ;;  %p2670_p2 = scmp.lt.s32.totalorder %s2668_s4, %s2661_s25 }
  0x22   : > { %p2665_p12 = pneg %p2664_p11 }
  0x23   : > { %p2671_p4 = por %p2670_p2, %p2669_p13 }
  0x25   : > { %p2672_p6 = pnand %p2671_p4, %p2665_p12 }
  0x27   : > { %2675 = shalt.err (!%p2672_p6)
}
  0x28   : > { %s2859_s5 = smov 512   ;;  %s2860_s27 = smov 256  }
  0x29   : > { %s2861_s6 = smov 16   ;;  %p219_p10 = scmp.lt.s32.totalorder %s2856_s22, 5 }
  0x2a   : > { %2246 = dma.hbm_to_vmem [thread:$0]  (!%p2978_p7), %s188_s7, 8192, %s190_s9, %s2983_s11, %s2859_s5, %s2860_s27, %s2861_s6  }
  0x2b   : > { %p2996_p11 = pnand %p2004_p8, %p219_p10  ;;  %s3001_s25 = sadd.s32 4294967295, %s2856_s22  }
  0x2c   : > { %s1990_s26 = sadd.s32 4294967294, %s2856_s22   ;;  %s34_s30 = sadd.s32 1, %s2852_s21 }
  0x2d   : > { %s41_s4 = sadd.s32 1, %s2836_s17  ;;  %s3571_s30 = smov (!%p2947_p1, %s34_s30), %s2852_s21 }
  0x2e   : > { %p48_p12 = scmp.ne.s32.totalorder %s2836_s17, %s2832_s16  ;;  %p54_p13 = scmp.ne.s32.totalorder %s2832_s16, %s2828_s15 }
  0x2f   : > { %p36_p8 = scmp.ge.s32.totalorder %s3571_s30, 2  ;;  %p55_p2 = scmp.eq.s32.totalorder %s3001_s25, 0 }
  0x30   : > { %p3016_p4 = por %p49_p0, %p48_p12  ;;  %p130_p6 = scmp.eq.s32.totalorder %s3001_s25, 3 }
  0x31   : > { %s3573_s30 = smov (%p36_p8, %s3571_s30), 0  ;;  %p3026_p1 = por %p55_p2, %p54_p13 }
  0x32   : > { %3538 = sst [smem:[#allocation18_spill]] %s3573_s30  ;;  %p3033_p10 = por %p80_p3, %p55_p2 }
  0x33   : > { %s38_s5 = ssub.s32 %s2852_s21, %s3573_s30  ;;  %p3039_p0 = por %p130_p6, %p48_p12 }
  0x34   : > { %p39_p9 = scmp.eq.s32.totalorder %s38_s5, 0  ;;  %p136_p8 = scmp.eq.s32.totalorder %s1990_s26, 3 }
  0x35   : > { %s3541_s27 = scalar_select %p3039_p0, 1, 0 }
  0x36   : > { %s156_s6 = sand.u32 1, %s2836_s17   ;;  %s2178_s28 = sshll.u32 %s2852_s21, 11 }
  0x37   : > { %3542 = sst [smem:[#allocation19_spill]] %s3541_s27  ;;  %p3051_p5 = por %p136_p8, %p54_p13 }
  0x38   : > { %s3046_s1 = scalar_select %p39_p9, %s2836_s17, %s41_s4  }
  0x39   : > { %s3544_s23 = scalar_select %p3051_p5, 1, 0 }
  0x3a   : > { %3543 = sst [smem:[#allocation20_spill]] %s3046_s1  ;;  %s1993_s12 = sshll.u32 %s156_s6, 7 }
  0x3b   : > { %3545 = sst [smem:[#allocation21_spill]] %s3544_s23  ;;  %p3547_p3 = scmp.lt.s32.totalorder %s2856_s22, 4 }
  0x3c   : > { %s3546_s0 = sld [smem:[#allocation22_spill]]  ;;  %s160_s26 = scalar_lea.vmem [#allocation3], %s1993_s12 }
  0x3d   : > { %p3062_p12 = pnand %p3547_p3, %p3016_p4  ;;  %s168_s4 = sshll.u32 %s160_s26, 4  ;;  %s169_s4 = int_to_ptr.vmem [resolvable:$true] %s168_s4 }
  0x3e   : > { %s3549_s5 = sand.u32 1, %s2824_s14   ;;  %s157_s1 = scalar_lea.sflag [#allocation4], %s156_s6 }
  0x3f   : > { %s2000_s21 = sshll.u32 %s3549_s5, 8  ;;  %p2678_p9 = pneg %p3062_p12 }
  0x40   : > { %s2689_s17 = scalar_lea.vmem %s169_s4, 2048  ;;  %s2862_s3 = smov [#allocation3]  }
  0x41   : > { %p2690_p13 = scmp.ne.s32.totalorder %s169_s4, %s2689_s17 }
  0x42   : > { %s167_s30 = scalar_lea.hbm %s3546_s0, %s2178_s28  ;;  %s2694_s28 = sshll.u32 %s2862_s3, 4  ;;  %s2695_s28 = int_to_ptr.vmem [resolvable:$false] %s2694_s28 }
  0x43   : > { %p2692_p2 = pnand %p2690_p13, %p2678_p9  ;;  %s2696_s29 = scalar_lea.vmem %s2695_s28, 4096 }
  0x44   : > { %p2697_p4 = scmp.lt.s32.totalorder %s169_s4, %s2695_s28  ;;  %p2698_p8 = scmp.lt.s32.totalorder %s2696_s29, %s2689_s17 }
  0x45   : > { %p2693_p6 = pneg %p2692_p2 }
  0x46   : > { %p2699_p3 = por %p2698_p8, %p2697_p4 }
  0x48   : > { %p2700_p5 = pnand %p2699_p3, %p2693_p6 }
  0x4a   : > { %2703 = shalt.err (!%p2700_p5)
}
  0x4b   : > { %s2863_s7 = smov 128   ;;  %s2864_s6 = smov 8  }
  0x4c   : > { %2243 = dma.hbm_to_vmem [thread:$0]  (!%p3062_p12), %s167_s30, 2048, %s169_s4, %s157_s1, %s2863_s7, %s2863_s7, %s2864_s6  }
  0x4d   : > { %s2181_s12 = sshll.u32 %s2848_s20, 12  ;;  %s203_s3 = scalar_lea.vmem [#allocation8], %s2000_s21 }
  0x4e   : > { %s210_s0 = scalar_lea.hbm %s3511_s2, %s2181_s12  ;;  %s211_s14 = sshll.u32 %s203_s3, 4  ;;  %s212_s14 = int_to_ptr.vmem [resolvable:$true] %s211_s14 }
  0x4f   : > { %s2717_s28 = scalar_lea.vmem %s212_s14, 4096  ;;  %p3550_p13 = pneg %p2978_p7 }
  0x50   : > { %p2718_p9 = scmp.ne.s32.totalorder %s212_s14, %s2717_s28  ;;  %s2865_s17 = smov [#allocation8]  }
  0x51   : > { %s2722_s29 = sshll.u32 %s2865_s17, 4  ;;  %s2723_s29 = int_to_ptr.vmem [resolvable:$false] %s2722_s29 }
  0x52   : > { %p2720_p5 = pnand %p2718_p9, %p3550_p13  ;;  %s2724_s23 = scalar_lea.vmem %s2723_s29, 8192 }
  0x53   : > { %p2725_p6 = scmp.lt.s32.totalorder %s212_s14, %s2723_s29  ;;  %p2726_p12 = scmp.lt.s32.totalorder %s2724_s23, %s2717_s28 }
  0x54   : > { %p2721_p2 = pneg %p2720_p5 }
  0x55   : > { %p2727_p4 = por %p2726_p12, %p2725_p6 }
  0x57   : > { %p2728_p8 = pnand %p2727_p4, %p2721_p2 }
  0x59   : > { %2731 = shalt.err (!%p2728_p8)
}
  0x5a   : > { %2249 = dma.hbm_to_vmem [thread:$0]  (!%p2978_p7), %s210_s0, 4096, %s212_s14, %s2983_s11, %s2863_s7, %s2863_s7, %s2864_s6  }
  0x5b   : > { %223 = sbr.rel (%p2996_p11) target bundleno = 729 (0x2d9), region = 32  ;;  %s3085_s1 = sand.u32 (!%p2996_p11), 1, %s2832_s16  }
  0x5c   : > { %s2005_s21 = sshll.u32 (!%p2996_p11), %s3085_s1, 7  ;;  %s226_s30 = scalar_lea.sflag (!%p2996_p11), [#allocation4], %s3085_s1 }
  0x5d   : > { %s3089_s27 = scalar_lea.vmem (!%p2996_p11), [#allocation3], %s2005_s21 }
  0x60   : > { %2803 = dma.done.wait (%p3026_p1), %s226_s30, 2048  }
  0x61   : > { %2805 = vsyncadd (%p3026_p1), %s226_s30, 4294965248  ;;  %s234_s0 = sand.u32 1, %s3001_s25   ;;  %s236_s14 = sand.u32 1, %s2820_s13  }
  0x62   : > { %s2006_s23 = sshll.u32 %s236_s14, 9  ;;  %s235_s10 = scalar_lea.sflag [#allocation7], %s234_s0 }
  0x63   : > { %s3097_s11 = scalar_lea.vmem [#allocation6], %s2006_s23 }
  0x64   : > { %2807 = dma.done.wait (%p3033_p10), %s235_s10, 12288  }
  0x65   : > { %2809 = vsyncadd (%p3033_p10), %s235_s10, 4294955008  ;;  %s2007_s8 = sshll.u32 %s236_s14, 8  ;;  %s3105_s7 = scalar_lea.vmem [#allocation9], %s2005_s21 }
  0x66   : > { %s3103_s4 = scalar_lea.vmem [#allocation8], %s2007_s8  ;;  %p2009_p7 = scmp.ne.s32.totalorder %s2840_s18, 0 }
  0x68   : > { %287 = sbr.rel (%p2009_p7) target bundleno = 126 (0x7e), region = 48 }
  0x6d   : > { %v2866_v0 = vmov 0.0  }
  0x6e   : > { %288 = vst [vmem:[#allocation2 + $0xb0] sm:$0xff] %v2866_v0  ;;  %289 = vst [vmem:[#allocation2] sm:$0xff] %v2866_v0 }
  0x6f   : > { %290 = vst [vmem:[#allocation2 + $0xd8] sm:$0xff] %v2866_v0  ;;  %291 = vst [vmem:[#allocation2 + $0x18] sm:$0xff] %v2866_v0 }
  0x70   : > { %292 = vst [vmem:[#allocation2 + $0x50] sm:$0xff] %v2866_v0  ;;  %293 = vst [vmem:[#allocation2 + $0x68] sm:$0xff] %v2866_v0 }
  0x71   : > { %294 = vst [vmem:[#allocation2 + $0x30] sm:$0xff] %v2866_v0  ;;  %295 = vst [vmem:[#allocation2 + $0x48] sm:$0xff] %v2866_v0 }
  0x72   : > { %296 = vst [vmem:[#allocation2 + $0x80] sm:$0xff] %v2866_v0  ;;  %297 = vst [vmem:[#allocation2 + $0x88] sm:$0xff] %v2866_v0 }
  0x73   : > { %298 = vst [vmem:[#allocation2 + $0xe8] sm:$0xff] %v2866_v0  ;;  %299 = vst [vmem:[#allocation2 + $0xb8] sm:$0xff] %v2866_v0 }
  0x74   : > { %300 = vst [vmem:[#allocation2 + $0x60] sm:$0xff] %v2866_v0  ;;  %301 = vst [vmem:[#allocation2 + $0xf0] sm:$0xff] %v2866_v0 }
  0x75   : > { %302 = vst [vmem:[#allocation2 + $0x8] sm:$0xff] %v2866_v0  ;;  %303 = vst [vmem:[#allocation2 + $0x78] sm:$0xff] %v2866_v0 }
  0x76   : > { %304 = vst [vmem:[#allocation2 + $0x38] sm:$0xff] %v2866_v0  ;;  %305 = vst [vmem:[#allocation2 + $0x58] sm:$0xff] %v2866_v0 }
  0x77   : > { %306 = vst [vmem:[#allocation2 + $0x40] sm:$0xff] %v2866_v0  ;;  %307 = vst [vmem:[#allocation2 + $0xc8] sm:$0xff] %v2866_v0 }
  0x78   : > { %308 = vst [vmem:[#allocation2 + $0xe0] sm:$0xff] %v2866_v0  ;;  %309 = vst [vmem:[#allocation2 + $0x90] sm:$0xff] %v2866_v0 }
  0x79   : > { %310 = vst [vmem:[#allocation2 + $0x70] sm:$0xff] %v2866_v0  ;;  %311 = vst [vmem:[#allocation2 + $0xc0] sm:$0xff] %v2866_v0 }
  0x7a   : > { %312 = vst [vmem:[#allocation2 + $0xa8] sm:$0xff] %v2866_v0  ;;  %313 = vst [vmem:[#allocation2 + $0xd0] sm:$0xff] %v2866_v0 }
  0x7b   : > { %314 = vst [vmem:[#allocation2 + $0x10] sm:$0xff] %v2866_v0  ;;  %315 = vst [vmem:[#allocation2 + $0x28] sm:$0xff] %v2866_v0 }
  0x7c   : > { %316 = vst [vmem:[#allocation2 + $0xa0] sm:$0xff] %v2866_v0  ;;  %317 = vst [vmem:[#allocation2 + $0xf8] sm:$0xff] %v2866_v0 }
  0x7d   : > { %318 = vst [vmem:[#allocation2 + $0x20] sm:$0xff] %v2866_v0  ;;  %319 = vst [vmem:[#allocation2 + $0x98] sm:$0xff] %v2866_v0 }
  0x7e PF: > { %v2352_v1 = vld [vmem:[%s3097_s11 + $0xe4] ss:$16 sps:$4 sm:$0xff]   ;;  %v2354_v2 = vld [vmem:[%s3097_s11 + $0xe0] ss:$16 sps:$4 sm:$0xff]   ;;  %v2375_v9 = vld [vmem:[%s3097_s11 + $0xec] ss:$16 sps:$4 sm:$0xff]  }
  0x7f   : > { %800 = vmatprep.subr.bf16.mxu0 %v2352_v1  ;;  %v2355_v3 = vld [vmem:[%s3097_s11 + $0xc4] ss:$16 sps:$4 sm:$0xff]   ;;  %v2357_v4 = vld [vmem:[%s3097_s11 + $0xc0] ss:$16 sps:$4 sm:$0xff]   ;;  %v2378_v10 = vld [vmem:[%s3097_s11 + $0xe8] ss:$16 sps:$4 sm:$0xff]   ;;  %913 = vmatprep.subr.bf16.mxu1 %v2375_v9 }
  0x80   : > { %801 = vmatpush1.bf16.msra.mxu0 %v2354_v2  ;;  %v2358_v5 = vld [vmem:[%s3097_s11 + $0xa4] ss:$16 sps:$4 sm:$0xff]   ;;  %v2360_v6 = vld [vmem:[%s3097_s11 + $0xa0] ss:$16 sps:$4 sm:$0xff]   ;;  %v2381_v12 = vld [vmem:[%s3097_s11 + $0xcc] ss:$16 sps:$4 sm:$0xff]   ;;  %914 = vmatpush1.bf16.msra.mxu1 %v2378_v10 }
  0x81   : > { %802 = vmatprep.subr.bf16.mxu0 %v2355_v3  ;;  %v2361_v7 = vld [vmem:[%s3097_s11 + $0x84] ss:$16 sps:$4 sm:$0xff]   ;;  %v2363_v8 = vld [vmem:[%s3097_s11 + $0x80] ss:$16 sps:$4 sm:$0xff]   ;;  %v2384_v13 = vld [vmem:[%s3097_s11 + $0xc8] ss:$16 sps:$4 sm:$0xff]   ;;  %915 = vmatprep.subr.bf16.mxu1 %v2381_v12 }
  0x82   : > { %v2364_v11 = vld [vmem:[%s3097_s11 + $0x64] ss:$16 sps:$4 sm:$0xff]   ;;  %v2366_v14 = vld [vmem:[%s3097_s11 + $0x60] ss:$16 sps:$4 sm:$0xff]   ;;  %v2387_v16 = vld [vmem:[%s3097_s11 + $0xac] ss:$16 sps:$4 sm:$0xff]  }
  0x83   : > { %v2367_v15 = vld [vmem:[%s3097_s11 + $0x44] ss:$16 sps:$4 sm:$0xff]   ;;  %v2390_v17 = vld [vmem:[%s3097_s11 + $0xa8] ss:$16 sps:$4 sm:$0xff]   ;;  %v2369_v18 = vld [vmem:[%s3097_s11 + $0x40] ss:$16 sps:$4 sm:$0xff]  }
  0x84   : > { %803 = vmatpush1.bf16.msra.mxu0 %v2357_v4  ;;  %916 = vmatpush1.bf16.msra.mxu1 %v2384_v13  ;;  %v2393_v19 = vld [vmem:[%s3097_s11 + $0x8c] ss:$16 sps:$4 sm:$0xff]   ;;  %v2370_v20 = vld [vmem:[%s3097_s11 + $0x24] ss:$16 sps:$4 sm:$0xff]   ;;  %v2372_v21 = vld [vmem:[%s3097_s11 + $0x20] ss:$16 sps:$4 sm:$0xff]  }
  0x85   : > { %804 = vmatprep.subr.bf16.mxu0 %v2358_v5  ;;  %917 = vmatprep.subr.bf16.mxu1 %v2387_v16  ;;  %v2396_v22 = vld [vmem:[%s3097_s11 + $0x88] ss:$16 sps:$4 sm:$0xff]   ;;  %v2399_v23 = vld [vmem:[%s3097_s11 + $0x6c] ss:$16 sps:$4 sm:$0xff]   ;;  %v2373_v24 = vld [vmem:[%s3097_s11 + $0x4] ss:$16 sps:$4 sm:$0xff]  }
  0x86   : > { %v2402_v25 = vld [vmem:[%s3097_s11 + $0x68] ss:$16 sps:$4 sm:$0xff]   ;;  %v2377_v26 = vld [vmem:[%s3097_s11] ss:$16 sps:$4 sm:$0xff]   ;;  %v2405_v27 = vld [vmem:[%s3097_s11 + $0x4c] ss:$16 sps:$4 sm:$0xff]  }
  0x87   : > { %v2379_v28 = vld [vmem:[%s3097_s11 + $0x1e4] ss:$16 sps:$4 sm:$0xff]   ;;  %v2383_v29 = vld [vmem:[%s3097_s11 + $0x1e0] ss:$16 sps:$4 sm:$0xff]   ;;  %v2408_v30 = vld [vmem:[%s3097_s11 + $0x48] ss:$16 sps:$4 sm:$0xff]  }
  0x88   : > { %805 = vmatpush1.bf16.msra.mxu0 %v2360_v6  ;;  %918 = vmatpush1.bf16.msra.mxu1 %v2390_v17  ;;  %v2411_v31 = vld [vmem:[%s3097_s11 + $0x2c] ss:$16 sps:$4 sm:$0xff]   ;;  %v2385_v32 = vld [vmem:[%s3097_s11 + $0x1c4] ss:$16 sps:$4 sm:$0xff]   ;;  %v2414_v33 = vld [vmem:[%s3097_s11 + $0x28] ss:$16 sps:$4 sm:$0xff]  }
  0x89   : > { %806 = vmatprep.subr.bf16.mxu0 %v2361_v7  ;;  %919 = vmatprep.subr.bf16.mxu1 %v2393_v19  ;;  %v2429_v34 = vld [vmem:[%s3089_s27 + $0x4] ss:$8 sps:$4 sm:$0xff]   ;;  %v2389_v35 = vld [vmem:[%s3097_s11 + $0x1c0] ss:$16 sps:$4 sm:$0xff]   ;;  %v2420_v38 = vld [vmem:[%s3097_s11 + $0x8] ss:$16 sps:$4 sm:$0xff]  }
  0x8a   : > { %v2417_v36 = vld [vmem:[%s3097_s11 + $0xc] ss:$16 sps:$4 sm:$0xff]   ;;  %v2391_v37 = vld [vmem:[%s3097_s11 + $0x1a4] ss:$16 sps:$4 sm:$0xff]   ;;  %832 = vmatprep.mubr.bf16.mxu0 %v2429_v34  ;;  %945 = vmatprep.mubr.bf16.mxu1 %v2429_v34  ;;  %v2395_v39 = vld [vmem:[%s3097_s11 + $0x1a0] ss:$16 sps:$4 sm:$0xff]  }
  0x8b   : > { %v2423_v40 = vld [vmem:[%s3097_s11 + $0x1ec] ss:$16 sps:$4 sm:$0xff]   ;;  %v2397_v41 = vld [vmem:[%s3097_s11 + $0x184] ss:$16 sps:$4 sm:$0xff]   ;;  %v2426_v42 = vld [vmem:[%s3097_s11 + $0x1e8] ss:$16 sps:$4 sm:$0xff]  }
  0x8c   : > { %807 = vmatpush1.bf16.msra.mxu0 %v2363_v8  ;;  %920 = vmatpush1.bf16.msra.mxu1 %v2396_v22  ;;  %v2401_v43 = vld [vmem:[%s3097_s11 + $0x180] ss:$16 sps:$4 sm:$0xff]   ;;  %v2430_v44 = vld [vmem:[%s3097_s11 + $0x1cc] ss:$16 sps:$4 sm:$0xff]   ;;  %v2403_v45 = vld [vmem:[%s3097_s11 + $0x164] ss:$16 sps:$4 sm:$0xff]  }
  0x8d   : > { %808 = vmatprep.subr.bf16.mxu0 %v2364_v11  ;;  %921 = vmatprep.subr.bf16.mxu1 %v2399_v23  ;;  %v2432_v46 = vld [vmem:[%s3097_s11 + $0x1c8] ss:$16 sps:$4 sm:$0xff]   ;;  %v2407_v47 = vld [vmem:[%s3097_s11 + $0x160] ss:$16 sps:$4 sm:$0xff]   ;;  %v2433_v48 = vld [vmem:[%s3097_s11 + $0x1ac] ss:$16 sps:$4 sm:$0xff]  }
  0x8e   : > { %v2409_v49 = vld [vmem:[%s3097_s11 + $0x144] ss:$16 sps:$4 sm:$0xff]   ;;  %v2435_v50 = vld [vmem:[%s3097_s11 + $0x1a8] ss:$16 sps:$4 sm:$0xff]   ;;  %v2413_v51 = vld [vmem:[%s3097_s11 + $0x140] ss:$16 sps:$4 sm:$0xff]  }
  0x8f   : > { %v2439_v52 = vld [vmem:[%s3097_s11 + $0x18c] ss:$16 sps:$4 sm:$0xff]   ;;  %v2415_v53 = vld [vmem:[%s3097_s11 + $0x124] ss:$16 sps:$4 sm:$0xff]   ;;  %v2441_v54 = vld [vmem:[%s3097_s11 + $0x188] ss:$16 sps:$4 sm:$0xff]  }
  0x90   : > { %809 = vmatpush1.bf16.msra.mxu0 %v2366_v14  ;;  %922 = vmatpush1.bf16.msra.mxu1 %v2402_v25  ;;  %v2419_v55 = vld [vmem:[%s3097_s11 + $0x120] ss:$16 sps:$4 sm:$0xff]   ;;  %v2442_v56 = vld [vmem:[%s3097_s11 + $0x16c] ss:$16 sps:$4 sm:$0xff]   ;;  %v2421_v57 = vld [vmem:[%s3097_s11 + $0x104] ss:$16 sps:$4 sm:$0xff]  }
  0x91   : > { %810 = vmatprep.subr.bf16.mxu0 %v2367_v15  ;;  %923 = vmatprep.subr.bf16.mxu1 %v2405_v27  ;;  %v2425_v58 = vld [vmem:[%s3097_s11 + $0x100] ss:$16 sps:$4 sm:$0xff]   ;;  %v2444_v59 = vld [vmem:[%s3097_s11 + $0x168] ss:$16 sps:$4 sm:$0xff]   ;;  %v2448_v60 = vld [vmem:[%s3097_s11 + $0x14c] ss:$16 sps:$4 sm:$0xff]  }
  0x92   : > { %v2474_v61 = vld [vmem:[%s3103_s4 + $0x74] ss:$8 sps:$4 sm:$0xff]   ;;  %v2427_v62 = vld [vmem:[%s3089_s27] ss:$8 sps:$4 sm:$0xff]   ;;  %v2472_v2 = vld [vmem:[%s3103_s4 + $0x70] ss:$8 sps:$4 sm:$0xff]  }
  0x93   : > { %v2450_v63 = vld [vmem:[%s3097_s11 + $0x148] ss:$16 sps:$4 sm:$0xff]   ;;  %v2436_v0 = vld [vmem:[%s3089_s27 + $0x14] ss:$8 sps:$4 sm:$0xff]   ;;  %v2477_v3 = vld [vmem:[%s3103_s4 + $0x64] ss:$8 sps:$4 sm:$0xff]  }
  0x94   : > { %811 = vmatpush1.bf16.msra.mxu0 %v2369_v18  ;;  %924 = vmatpush1.bf16.msra.mxu1 %v2408_v30  ;;  %v2451_v1 = vld [vmem:[%s3097_s11 + $0x12c] ss:$16 sps:$4 sm:$0xff]   ;;  %v2453_v4 = vld [vmem:[%s3097_s11 + $0x128] ss:$16 sps:$4 sm:$0xff]   ;;  %p2154_p11 = scmp.ne.s32.totalorder %s2840_s18, 1 }
  0x95   : > { %812 = vmatprep.subr.bf16.mxu0 %v2370_v20  ;;  %925 = vmatprep.subr.bf16.mxu1 %v2411_v31  ;;  %v2457_v5 = vld [vmem:[%s3097_s11 + $0x10c] ss:$16 sps:$4 sm:$0xff]   ;;  %v2475_v6 = vld [vmem:[%s3103_s4 + $0x60] ss:$8 sps:$4 sm:$0xff]   ;;  %v2438_v8 = vld [vmem:[%s3089_s27 + $0x10] ss:$8 sps:$4 sm:$0xff]  }
  0x96   : > { %v2480_v7 = vld [vmem:[%s3103_s4 + $0x54] ss:$8 sps:$4 sm:$0xff]   ;;  %v2459_v9 = vld [vmem:[%s3097_s11 + $0x108] ss:$16 sps:$4 sm:$0xff]   ;;  %v2445_v10 = vld [vmem:[%s3089_s27 + $0x24] ss:$8 sps:$4 sm:$0xff]  }
  0x97   : > { %v2478_v11 = vld [vmem:[%s3103_s4 + $0x50] ss:$8 sps:$4 sm:$0xff]   ;;  %v2483_v12 = vld [vmem:[%s3103_s4 + $0x44] ss:$8 sps:$4 sm:$0xff]   ;;  %v2481_v13 = vld [vmem:[%s3103_s4 + $0x40] ss:$8 sps:$4 sm:$0xff]  }
  0x98   : > { %813 = vmatpush1.bf16.msra.mxu0 %v2372_v21  ;;  %926 = vmatpush1.bf16.msra.mxu1 %v2414_v33  ;;  %v2486_v14 = vld [vmem:[%s3103_s4 + $0x34] ss:$8 sps:$4 sm:$0xff]   ;;  %v2447_v15 = vld [vmem:[%s3089_s27 + $0x20] ss:$8 sps:$4 sm:$0xff]   ;;  %v2484_v17 = vld [vmem:[%s3103_s4 + $0x30] ss:$8 sps:$4 sm:$0xff]  }
  0x99   : > { %814 = vmatprep.subr.bf16.mxu0 %v2373_v24  ;;  %927 = vmatprep.subr.bf16.mxu1 %v2417_v36  ;;  %v2454_v16 = vld [vmem:[%s3089_s27 + $0x34] ss:$8 sps:$4 sm:$0xff]   ;;  %v2456_v18 = vld [vmem:[%s3089_s27 + $0x30] ss:$8 sps:$4 sm:$0xff]   ;;  %v2460_v19 = vld [vmem:[%s3089_s27 + $0x44] ss:$8 sps:$4 sm:$0xff]  }
  0x9a   : > { %v2462_v20 = vld [vmem:[%s3089_s27 + $0x40] ss:$8 sps:$4 sm:$0xff]   ;;  %v2463_v21 = vld [vmem:[%s3089_s27 + $0x54] ss:$8 sps:$4 sm:$0xff]   ;;  %v2465_v22 = vld [vmem:[%s3089_s27 + $0x50] ss:$8 sps:$4 sm:$0xff]  }
  0x9b   : > { %v2466_v23 = vld [vmem:[%s3089_s27 + $0x64] ss:$8 sps:$4 sm:$0xff]   ;;  %v2468_v24 = vld [vmem:[%s3089_s27 + $0x60] ss:$8 sps:$4 sm:$0xff]   ;;  %v2469_v25 = vld [vmem:[%s3089_s27 + $0x74] ss:$8 sps:$4 sm:$0xff]  }
  0x9c   : > { %815 = vmatpush1.bf16.msra.mxu0 %v2377_v26  ;;  %928 = vmatpush1.bf16.msra.mxu1 %v2420_v38  ;;  %v2471_v26 = vld [vmem:[%s3089_s27 + $0x70] ss:$8 sps:$4 sm:$0xff]   ;;  %v2489_v27 = vld [vmem:[%s3103_s4 + $0x24] ss:$8 sps:$4 sm:$0xff]   ;;  %v2498_v33 = vld [vmem:[%s3103_s4 + $0xf4] ss:$8 sps:$4 sm:$0xff]  }
  0x9d   : > { %816 = vmatprep.subr.bf16.mxu0 %v2379_v28  ;;  %929 = vmatprep.subr.bf16.mxu1 %v2423_v40  ;;  %v2487_v28 = vld [vmem:[%s3103_s4 + $0x20] ss:$8 sps:$4 sm:$0xff]   ;;  %v2490_v30 = vld [vmem:[%s3103_s4 + $0x10] ss:$8 sps:$4 sm:$0xff]   ;;  %v2495_v31 = vld [vmem:[%s3103_s4 + $0x4] ss:$8 sps:$4 sm:$0xff]  }
  0x9e   : > { %v2496_v34 = vld [vmem:[%s3103_s4 + $0xf0] ss:$8 sps:$4 sm:$0xff]   ;;  %v2499_v36 = vld [vmem:[%s3103_s4 + $0xe0] ss:$8 sps:$4 sm:$0xff]  }
  0x9f   : > { %v2502_v38 = vld [vmem:[%s3103_s4 + $0xd0] ss:$8 sps:$4 sm:$0xff]   ;;  %v2505_v40 = vld [vmem:[%s3103_s4 + $0xc0] ss:$8 sps:$4 sm:$0xff]  }
  0xa0   : > { %817 = vmatpush2.bf16.msra.mxu0 %v2383_v29  ;;  %930 = vmatpush2.bf16.msra.mxu1 %v2426_v42  ;;  %v2492_v29 = vld [vmem:[%s3103_s4 + $0x14] ss:$8 sps:$4 sm:$0xff]   ;;  %v2508_v42 = vld [vmem:[%s3103_s4 + $0xb0] ss:$8 sps:$4 sm:$0xff]  }
  0xa1   : > { %818 = vmatprep.subr.bf16.mxu0 %v2385_v32  ;;  %931 = vmatprep.subr.bf16.mxu1 %v2430_v44  ;;  %v2493_v32 = vld [vmem:[%s3103_s4] ss:$8 sps:$4 sm:$0xff]  }
  0xa2   : > { %v2511_v44 = vld [vmem:[%s3103_s4 + $0xa0] ss:$8 sps:$4 sm:$0xff]  }
  0xa4   : > { %819 = vmatpush2.bf16.msra.mxu0 %v2389_v35  ;;  %932 = vmatpush2.bf16.msra.mxu1 %v2432_v46  ;;  %v2501_v35 = vld [vmem:[%s3103_s4 + $0xe4] ss:$8 sps:$4 sm:$0xff]   ;;  %v2514_v46 = vld [vmem:[%s3103_s4 + $0x90] ss:$8 sps:$4 sm:$0xff]  }
  0xa5   : > { %820 = vmatprep.subr.bf16.mxu0 %v2391_v37  ;;  %933 = vmatprep.subr.bf16.mxu1 %v2433_v48  ;;  %v2504_v37 = vld [vmem:[%s3103_s4 + $0xd4] ss:$8 sps:$4 sm:$0xff]   ;;  %v2517_v48 = vld [vmem:[%s3103_s4 + $0x80] ss:$8 sps:$4 sm:$0xff]  }
  0xa8   : > { %821 = vmatpush2.bf16.msra.mxu0 %v2395_v39  ;;  %934 = vmatpush2.bf16.msra.mxu1 %v2435_v50  ;;  %v2507_v39 = vld [vmem:[%s3103_s4 + $0xc4] ss:$8 sps:$4 sm:$0xff]  }
  0xa9   : > { %822 = vmatprep.subr.bf16.mxu0 %v2397_v41  ;;  %935 = vmatprep.subr.bf16.mxu1 %v2439_v52  ;;  %v2510_v41 = vld [vmem:[%s3103_s4 + $0xb4] ss:$8 sps:$4 sm:$0xff]  }
  0xac   : > { %823 = vmatpush2.bf16.msra.mxu0 %v2401_v43  ;;  %936 = vmatpush2.bf16.msra.mxu1 %v2441_v54  ;;  %v2513_v43 = vld [vmem:[%s3103_s4 + $0xa4] ss:$8 sps:$4 sm:$0xff]  }
  0xad   : > { %824 = vmatprep.subr.bf16.mxu0 %v2403_v45  ;;  %937 = vmatprep.subr.bf16.mxu1 %v2442_v56  ;;  %v2516_v45 = vld [vmem:[%s3103_s4 + $0x94] ss:$8 sps:$4 sm:$0xff]  }
  0xb0   : > { %825 = vmatpush2.bf16.msra.mxu0 %v2407_v47  ;;  %938 = vmatpush2.bf16.msra.mxu1 %v2444_v59  ;;  %v2519_v47 = vld [vmem:[%s3103_s4 + $0x84] ss:$8 sps:$4 sm:$0xff]  }
  0xb1   : > { %826 = vmatprep.subr.bf16.mxu0 %v2409_v49  ;;  %939 = vmatprep.subr.bf16.mxu1 %v2448_v60 }
  0xb4   : > { %827 = vmatpush2.bf16.msra.mxu0 %v2413_v51  ;;  %940 = vmatpush2.bf16.msra.mxu1 %v2450_v63 }
  0xb5   : > { %828 = vmatprep.subr.bf16.mxu0 %v2415_v53  ;;  %941 = vmatprep.subr.bf16.mxu1 %v2451_v1 }
  0xb8   : > { %829 = vmatpush2.bf16.msra.mxu0 %v2419_v55  ;;  %942 = vmatpush2.bf16.msra.mxu1 %v2453_v4 }
  0xb9   : > { %830 = vmatprep.subr.bf16.mxu0 %v2421_v57  ;;  %943 = vmatprep.subr.bf16.mxu1 %v2457_v5 }
  0xbc   : > { %831 = vmatpush2.bf16.msra.mxu0 %v2425_v58  ;;  %944 = vmatpush2.bf16.msra.mxu1 %v2459_v9 }
  0xbd   : > { %1522 = vmatprep.subr.bf16.mxu0 %v2474_v61  ;;  %2200 = vmatprep.subr.bf16.mxu1 %v2474_v61 }
  0xbf   : > { %833 = vmatmul.mubr.bf16.vlgmr.msra.gmra.mxu0 %v2427_v62  ;;  %946 = vmatmul.mubr.bf16.vlgmr.msra.gmra.mxu1 %v2427_v62 }
  0xc0   : > { %842 = vmatprep.mubr.bf16.mxu0 %v2436_v0  ;;  %1523 = vmatpush1.bf16.msra.mxu0 %v2472_v2 }
  0xc1   : > { %1524 = vmatprep.subr.bf16.mxu0 %v2477_v3  ;;  %955 = vmatprep.mubr.bf16.mxu1 %v2436_v0 }
  0xc2   : > { %2216 = vmatpush1.bf16.msra.mxu1 %v2472_v2 }
  0xc3   : > { %2201 = vmatprep.subr.bf16.mxu1 %v2477_v3 }
  0xc4   : > { %1525 = vmatpush1.bf16.msra.mxu0 %v2475_v6 }
  0xc5   : > { %1526 = vmatprep.subr.bf16.mxu0 %v2480_v7 }
  0xc6   : > { %2217 = vmatpush1.bf16.msra.mxu1 %v2475_v6 }
  0xc7   : > { %843 = vmatmul.mubr.bf16.gmra.mxu0 %v2438_v8  ;;  %2202 = vmatprep.subr.bf16.mxu1 %v2480_v7 }
  0xc8   : > { %852 = vmatprep.mubr.bf16.mxu0 %v2445_v10  ;;  %1527 = vmatpush1.bf16.msra.mxu0 %v2478_v11 }
  0xc9   : > { %1528 = vmatprep.subr.bf16.mxu0 %v2483_v12  ;;  %956 = vmatmul.mubr.bf16.gmra.mxu1 %v2438_v8 }
  0xca   : > { %965 = vmatprep.mubr.bf16.mxu1 %v2445_v10  ;;  %2218 = vmatpush1.bf16.msra.mxu1 %v2478_v11 }
  0xcb   : > { %2203 = vmatprep.subr.bf16.mxu1 %v2483_v12 }
  0xcc   : > { %1529 = vmatpush1.bf16.msra.mxu0 %v2481_v13 }
  0xcd   : > { %1530 = vmatprep.subr.bf16.mxu0 %v2486_v14 }
  0xce   : > { %2219 = vmatpush1.bf16.msra.mxu1 %v2481_v13 }
  0xcf   : > { %853 = vmatmul.mubr.bf16.gmra.mxu0 %v2447_v15  ;;  %2204 = vmatprep.subr.bf16.mxu1 %v2486_v14 }
  0xd0   : > { %862 = vmatprep.mubr.bf16.mxu0 %v2454_v16  ;;  %1531 = vmatpush1.bf16.msra.mxu0 %v2484_v17 }
  0xd1   : > { %966 = vmatmul.mubr.bf16.gmra.mxu1 %v2447_v15  ;;  %1532 = vmatprep.subr.bf16.mxu0 %v2489_v27 }
  0xd2   : > { %975 = vmatprep.mubr.bf16.mxu1 %v2454_v16  ;;  %2220 = vmatpush1.bf16.msra.mxu1 %v2484_v17 }
  0xd3   : > { %2205 = vmatprep.subr.bf16.mxu1 %v2489_v27 }
  0xd4   : > { %1533 = vmatpush1.bf16.msra.mxu0 %v2487_v28 }
  0xd5   : > { %1534 = vmatprep.subr.bf16.mxu0 %v2492_v29 }
  0xd6   : > { %2221 = vmatpush1.bf16.msra.mxu1 %v2487_v28 }
  0xd7   : > { %863 = vmatmul.mubr.bf16.gmra.mxu0 %v2456_v18  ;;  %2206 = vmatprep.subr.bf16.mxu1 %v2492_v29 }
  0xd8   : > { %872 = vmatprep.mubr.bf16.mxu0 %v2460_v19  ;;  %1535 = vmatpush1.bf16.msra.mxu0 %v2490_v30 }
  0xd9   : > { %976 = vmatmul.mubr.bf16.gmra.mxu1 %v2456_v18  ;;  %1536 = vmatprep.subr.bf16.mxu0 %v2495_v31 }
  0xda   : > { %985 = vmatprep.mubr.bf16.mxu1 %v2460_v19  ;;  %2222 = vmatpush1.bf16.msra.mxu1 %v2490_v30 }
  0xdb   : > { %2207 = vmatprep.subr.bf16.mxu1 %v2495_v31 }
  0xdc   : > { %1537 = vmatpush1.bf16.msra.mxu0 %v2493_v32 }
  0xdd   : > { %1538 = vmatprep.subr.bf16.mxu0 %v2498_v33 }
  0xde   : > { %2223 = vmatpush1.bf16.msra.mxu1 %v2493_v32 }
  0xdf   : > { %873 = vmatmul.mubr.bf16.gmra.mxu0 %v2462_v20  ;;  %2208 = vmatprep.subr.bf16.mxu1 %v2498_v33 }
  0xe0   : > { %882 = vmatprep.mubr.bf16.mxu0 %v2463_v21  ;;  %1539 = vmatpush2.bf16.msra.mxu0 %v2496_v34 }
  0xe1   : > { %986 = vmatmul.mubr.bf16.gmra.mxu1 %v2462_v20  ;;  %1540 = vmatprep.subr.bf16.mxu0 %v2501_v35 }
  0xe2   : > { %995 = vmatprep.mubr.bf16.mxu1 %v2463_v21  ;;  %2224 = vmatpush2.bf16.msra.mxu1 %v2496_v34 }
  0xe3   : > { %2209 = vmatprep.subr.bf16.mxu1 %v2501_v35 }
  0xe4   : > { %1541 = vmatpush2.bf16.msra.mxu0 %v2499_v36 }
  0xe5   : > { %1542 = vmatprep.subr.bf16.mxu0 %v2504_v37 }
  0xe6   : > { %2225 = vmatpush2.bf16.msra.mxu1 %v2499_v36 }
  0xe7   : > { %883 = vmatmul.mubr.bf16.gmra.mxu0 %v2465_v22  ;;  %2210 = vmatprep.subr.bf16.mxu1 %v2504_v37 }
  0xe8   : > { %892 = vmatprep.mubr.bf16.mxu0 %v2466_v23  ;;  %1543 = vmatpush2.bf16.msra.mxu0 %v2502_v38 }
  0xe9   : > { %996 = vmatmul.mubr.bf16.gmra.mxu1 %v2465_v22  ;;  %1544 = vmatprep.subr.bf16.mxu0 %v2507_v39 }
  0xea   : > { %1005 = vmatprep.mubr.bf16.mxu1 %v2466_v23  ;;  %2226 = vmatpush2.bf16.msra.mxu1 %v2502_v38 }
  0xeb   : > { %2211 = vmatprep.subr.bf16.mxu1 %v2507_v39 }
  0xec   : > { %1545 = vmatpush2.bf16.msra.mxu0 %v2505_v40 }
  0xed   : > { %1546 = vmatprep.subr.bf16.mxu0 %v2510_v41 }
  0xee   : > { %2227 = vmatpush2.bf16.msra.mxu1 %v2505_v40 }
  0xef   : > { %893 = vmatmul.mubr.bf16.gmra.mxu0 %v2468_v24  ;;  %2212 = vmatprep.subr.bf16.mxu1 %v2510_v41 }
  0xf0   : > { %902 = vmatprep.mubr.bf16.mxu0 %v2469_v25  ;;  %1547 = vmatpush2.bf16.msra.mxu0 %v2508_v42 }
  0xf1   : > { %1006 = vmatmul.mubr.bf16.gmra.mxu1 %v2468_v24  ;;  %1548 = vmatprep.subr.bf16.mxu0 %v2513_v43 }
  0xf2   : > { %1015 = vmatprep.mubr.bf16.mxu1 %v2469_v25  ;;  %2228 = vmatpush2.bf16.msra.mxu1 %v2508_v42 }
  0xf3   : > { %2213 = vmatprep.subr.bf16.mxu1 %v2513_v43 }
  0xf4   : > { %1549 = vmatpush2.bf16.msra.mxu0 %v2511_v44 }
  0xf5   : > { %1550 = vmatprep.subr.bf16.mxu0 %v2516_v45 }
  0xf6   : > { %2229 = vmatpush2.bf16.msra.mxu1 %v2511_v44 }
  0xf7   : > { %903 = vmatmul.mubr.bf16.gmra.mxu0 %v2471_v26  ;;  %2214 = vmatprep.subr.bf16.mxu1 %v2516_v45 }
  0xf8   : > { %1551 = vmatpush2.bf16.msra.mxu0 %v2514_v46 }
  0xf9   : > { %1016 = vmatmul.mubr.bf16.gmra.mxu1 %v2471_v26  ;;  %1552 = vmatprep.subr.bf16.mxu0 %v2519_v47 }
  0xfa   : > { %2230 = vmatpush2.bf16.msra.mxu1 %v2514_v46 }
  0xfb   : > { %2215 = vmatprep.subr.bf16.mxu1 %v2519_v47 }
  0xfc   : > { %1553 = vmatpush2.bf16.msra.mxu0 %v2517_v48 }
  0xfe   : > { %2231 = vmatpush2.bf16.msra.mxu1 %v2517_v48 }
 0x17f   : > { %v3220_v49 = vpop.f32.mrf.mxu0  ;;  %v3238_v61 = vpop.f32.mrf.mxu1 }
 0x180   : > { %v2090_v50 = vmul.f32 -1.442695, %v3220_v49 }
 0x181   : > { %v3223_v51 = vpop.f32.mrf.mxu0  ;;  %v3243_v0 = vpop.f32.mrf.mxu1 }
 0x182   : > { %2520 = vpow2.f32 %v2090_v50  ;;  %v2091_v52 = vmul.f32 -1.442695, %v3223_v51 }
 0x183   : > { %v3226_v53 = vpop.f32.mrf.mxu0  ;;  %v3248_v3 = vpop.f32.mrf.mxu1 }
 0x184   : > { %2522 = vpow2.f32 %v2091_v52  ;;  %v2092_v54 = vmul.f32 -1.442695, %v3226_v53 }
 0x185   : > { %v3229_v55 = vpop.f32.mrf.mxu0  ;;  %v3253_v8 = vpop.f32.mrf.mxu1 }
 0x186   : > { %2524 = vpow2.f32 %v2092_v54  ;;  %v2093_v56 = vmul.f32 -1.442695, %v3229_v55 }
 0x187   : > { %v3232_v57 = vpop.f32.mrf.mxu0 }
 0x188   : > { %2526 = vpow2.f32 %v2093_v56  ;;  %v2094_v58 = vmul.f32 -1.442695, %v3232_v57 }
 0x189   : > { %v3235_v59 = vpop.f32.mrf.mxu0  ;;  %v3258_v13 = vpop.f32.mrf.mxu1 }
 0x18a   : > { %2528 = vpow2.f32 %v2094_v58  ;;  %v2095_v60 = vmul.f32 -1.442695, %v3235_v59 }
 0x18b   : > { %v3240_v62 = vpop.f32.mrf.mxu0  ;;  %v3263_v18 = vpop.f32.mrf.mxu1 }
 0x18c   : > { %2530 = vpow2.f32 %v2095_v60  ;;  %v2096_v63 = vmul.f32 -1.442695, %v3240_v62 }
 0x18d   : > { %v3245_v1 = vpop.f32.mrf.mxu0  ;;  %v3268_v23 = vpop.f32.mrf.mxu1 }
 0x18e   : > { %2532 = vpow2.f32 %v2096_v63  ;;  %v2097_v2 = vmul.f32 -1.442695, %v3245_v1 }
 0x18f   : > { %v2521_v4 = vpop.eup %2520  ;;  %v3250_v5 = vpop.f32.mrf.mxu0 }
 0x190   : > { %v1122_v6 = vadd.f32 1.0, %v2521_v4  ;;  %2534 = vpow2.f32 %v2097_v2  ;;  %v2098_v7 = vmul.f32 -1.442695, %v3250_v5  ;;  %v3273_v28 = vpop.f32.mrf.mxu1 }
 0x191   : > { %v2523_v9 = vpop.eup %2522  ;;  %v3255_v10 = vpop.f32.mrf.mxu0 }
 0x192   : > { %2536 = vrcp.f32 %v1122_v6  ;;  %v1123_v11 = vadd.f32 1.0, %v2523_v9  ;;  %v2099_v12 = vmul.f32 -1.442695, %v3255_v10  ;;  %v3278_v33 = vpop.f32.mrf.mxu1 }
 0x193   : > { %v2525_v14 = vpop.eup %2524  ;;  %2538 = vpow2.f32 %v2098_v7  ;;  %v3260_v15 = vpop.f32.mrf.mxu0 }
 0x194   : > { %2540 = vrcp.f32 %v1123_v11  ;;  %v1124_v16 = vadd.f32 1.0, %v2525_v14  ;;  %v2100_v17 = vmul.f32 -1.442695, %v3260_v15  ;;  %v3283_v38 = vpop.f32.mrf.mxu1 }
 0x195   : > { %v2527_v19 = vpop.eup %2526  ;;  %2542 = vpow2.f32 %v2099_v12  ;;  %v3265_v20 = vpop.f32.mrf.mxu0 }
 0x196   : > { %2544 = vrcp.f32 %v1124_v16  ;;  %v1125_v21 = vadd.f32 1.0, %v2527_v19  ;;  %v2101_v22 = vmul.f32 -1.442695, %v3265_v20  ;;  %v3288_v43 = vpop.f32.mrf.mxu1 }
 0x197   : > { %v2529_v24 = vpop.eup %2528  ;;  %2546 = vpow2.f32 %v2100_v17  ;;  %v3270_v25 = vpop.f32.mrf.mxu0 }
 0x198   : > { %2548 = vrcp.f32 %v1125_v21  ;;  %v1126_v26 = vadd.f32 1.0, %v2529_v24  ;;  %v2102_v27 = vmul.f32 -1.442695, %v3270_v25  ;;  %v3293_v48 = vpop.f32.mrf.mxu1 }
 0x199   : > { %v2531_v29 = vpop.eup %2530  ;;  %2550 = vpow2.f32 %v2101_v22  ;;  %v3275_v30 = vpop.f32.mrf.mxu0 }
 0x19a   : > { %2552 = vrcp.f32 %v1126_v26  ;;  %v1127_v31 = vadd.f32 1.0, %v2531_v29  ;;  %v2103_v32 = vmul.f32 -1.442695, %v3275_v30  ;;  %v3298_v60 = vpop.f32.mrf.mxu1 }
 0x19b   : > { %v2533_v34 = vpop.eup %2532  ;;  %2554 = vpow2.f32 %v2102_v27  ;;  %v3280_v35 = vpop.f32.mrf.mxu0 }
 0x19c   : > { %2556 = vrcp.f32 %v1127_v31  ;;  %v1128_v36 = vadd.f32 1.0, %v2533_v34  ;;  %v2104_v37 = vmul.f32 -1.442695, %v3280_v35  ;;  %v3305_v12 = vpop.f32.mrf.mxu1 }
 0x19d   : > { %v2535_v39 = vpop.eup %2534  ;;  %2558 = vpow2.f32 %v2103_v32  ;;  %v3285_v40 = vpop.f32.mrf.mxu0 }
 0x19e   : > { %2560 = vrcp.f32 %v1128_v36  ;;  %v1129_v41 = vadd.f32 1.0, %v2535_v39  ;;  %v2105_v42 = vmul.f32 -1.442695, %v3285_v40  ;;  %v3312_v24 = vpop.f32.mrf.mxu1 }
 0x19f   : > { %v2537_v44 = vpop.eup %2536  ;;  %2562 = vpow2.f32 %v2104_v37  ;;  %v3290_v45 = vpop.f32.mrf.mxu0 }
 0x1a0   : > { %v2539_v46 = vpop.eup %2538  ;;  %2564 = vrcp.f32 %v1129_v41  ;;  %v2106_v47 = vmul.f32 -1.442695, %v3290_v45  ;;  %v1218_v16 = vmul.f32 %v2537_v44, %v3220_v49  ;;  %v3319_v34 = vpop.f32.mrf.mxu1 }
 0x1a1   : > { %v2541_v50 = vpop.eup %2540  ;;  %v1130_v52 = vadd.f32 1.0, %v2539_v46  ;;  %2566 = vpow2.f32 %v2105_v42  ;;  %v3295_v54 = vpop.f32.mrf.mxu0 }
 0x1a2   : > { %v2543_v56 = vpop.eup %2542  ;;  %2568 = vpow2.f32 %v2106_v47  ;;  %v2107_v58 = vmul.f32 -1.442695, %v3295_v54  ;;  %v1219_v7 = vmul.f32 %v2541_v50, %v3223_v51  ;;  %v1250_v37 = vmul.f32 %v1218_v16, %v3238_v61  ;;  %v3326_v46 = vpop.f32.mrf.mxu1 }
 0x1a3   : > { %v2545_v63 = vpop.eup %2544  ;;  %2570 = vrcp.f32 %v1130_v52  ;;  %v1131_v2 = vadd.f32 1.0, %v2543_v56  ;;  %v3300_v4 = vpop.f32.mrf.mxu0 }
 0x1a4   : > { %v2547_v6 = vpop.eup %2546  ;;  %v1220_v9 = vmul.f32 %v2545_v63, %v3226_v53  ;;  %2572 = vpow2.f32 %v2107_v58  ;;  %v2108_v11 = vmul.f32 -1.442695, %v3300_v4  ;;  %v1251_v31 = vmul.f32 %v1219_v7, %v3243_v0  ;;  %v3333_v63 = vpop.f32.mrf.mxu1 }
 0x1a5   : > { %v2549_v14 = vpop.eup %2548  ;;  %2574 = vrcp.f32 %v1131_v2  ;;  %v1132_v17 = vadd.f32 1.0, %v2547_v6  ;;  %v3308_v19 = vpop.f32.mrf.mxu0 }
 0x1a6   : > { %v2551_v21 = vpop.eup %2550  ;;  %v1221_v22 = vmul.f32 %v2549_v14, %v3229_v55  ;;  %2576 = vpow2.f32 %v2108_v11  ;;  %v2109_v51 = vmul.f32 -1.442695, %v3308_v19  ;;  %v1252_v27 = vmul.f32 %v1220_v9, %v3248_v3 }
 0x1a7   : > { %v2553_v53 = vpop.eup %2552  ;;  %2578 = vrcp.f32 %v1132_v17  ;;  %v1133_v26 = vadd.f32 1.0, %v2551_v21  ;;  %v3315_v29 = vpop.f32.mrf.mxu0 }
 0x1a8   : > { %v2555_v49 = vpop.eup %2554  ;;  %v1253_v32 = vmul.f32 %v1221_v22, %v3253_v8  ;;  %2580 = vpow2.f32 %v2109_v51  ;;  %v2110_v39 = vmul.f32 -1.442695, %v3315_v29  ;;  %v1282_v47 = vpack.c.bf16 %v1252_v27, %v1250_v37 }
 0x1a9   : > { %v2557_v55 = vpop.eup %2556  ;;  %2582 = vrcp.f32 %v1133_v26  ;;  %v1134_v36 = vadd.f32 1.0, %v2555_v49  ;;  %v3323_v41 = vpop.f32.mrf.mxu0  ;;  %v1222_v6 = vmul.f32 %v2553_v53, %v3232_v57 }
 0x1aa   : > { %v2559_v3 = vpop.eup %2558  ;;  %v1283_v42 = vpack.c.bf16 %v1253_v32, %v1251_v31  ;;  %v2111_v44 = vmul.f32 -1.442695, %v3323_v41  ;;  %v1223_v56 = vmul.f32 %v2557_v55, %v3235_v59  ;;  %v3339_v59 = vpop.f32.mrf.mxu1 }
 0x1ab   : > { %v2561_v0 = vpop.eup %2560  ;;  %2584 = vrcp.f32 %v1134_v36  ;;  %v1135_v8 = vadd.f32 1.0, %v2559_v3  ;;  %v3328_v50 = vpop.f32.mrf.mxu0  ;;  %v1254_v49 = vmul.f32 %v1222_v6, %v3258_v13 }
 0x1ac   : > { %v2563_v52 = vpop.eup %2562  ;;  %v1224_v61 = vmul.f32 %v2561_v0, %v3240_v62  ;;  %2586 = vpow2.f32 %v2110_v39  ;;  %v2112_v58 = vmul.f32 -1.442695, %v3328_v50  ;;  %1554 = vmatprep.mubr.bf16.mxu0 %v1283_v42  ;;  %v1255_v53 = vmul.f32 %v1223_v56, %v3263_v18 }
 0x1ad   : > { %v2565_v2 = vpop.eup %2564  ;;  %2588 = vrcp.f32 %v1135_v8  ;;  %v1136_v7 = vadd.f32 1.0, %v2563_v52  ;;  %v3336_v9 = vpop.f32.mrf.mxu0  ;;  %1555 = vmatmul.mubr.bf16.vlgmr.msra.gmra.mxu0 %v1282_v47 }
 0x1ae   : > { %v2567_v11 = vpop.eup %2566  ;;  %v1225_v14 = vmul.f32 %v2565_v2, %v3245_v1  ;;  %2590 = vpow2.f32 %v2111_v44  ;;  %v1256_v17 = vmul.f32 %v1224_v61, %v3268_v23  ;;  %v2113_v21 = vmul.f32 -1.442695, %v3336_v9  ;;  %v3347_v1 = vpop.f32.mrf.mxu1 }
 0x1af   : > { %v2569_v62 = vpop.eup %2568  ;;  %2592 = vrcp.f32 %v1136_v7  ;;  %v1137_v16 = vadd.f32 1.0, %v2567_v11  ;;  %v3343_v22 = vpop.f32.mrf.mxu0 }
 0x1b0   : > { %v2571_v57 = vpop.eup %2570  ;;  %v1138_v51 = vadd.f32 1.0, %v2569_v62  ;;  %v1257_v26 = vmul.f32 %v1225_v14, %v3273_v28  ;;  %2594 = vpow2.f32 %v2112_v58  ;;  %v2114_v31 = vmul.f32 -1.442695, %v3343_v22  ;;  %v3356_v13 = vpop.f32.mrf.mxu1 }
 0x1b1   : > { %v2573_v27 = vpop.eup %2572  ;;  %2596 = vrcp.f32 %v1137_v16  ;;  %v3351_v23 = vpop.f32.mrf.mxu0  ;;  %v1284_v39 = vpack.c.bf16 %v1256_v17, %v1254_v49  ;;  %v1226_v61 = vmul.f32 %v2571_v57, %v3250_v5 }
 0x1b2   : > { %v2575_v32 = vpop.eup %2574  ;;  %2598 = vrcp.f32 %v1138_v51  ;;  %v1139_v55 = vadd.f32 1.0, %v2573_v27  ;;  %v1285_v36 = vpack.c.bf16 %v1257_v26, %v1255_v53  ;;  %v2115_v18 = vmul.f32 -1.442695, %v3351_v23  ;;  %v3370_v14 = vpop.f32.mrf.mxu1 }
 0x1b3   : > { %v2577_v37 = vpop.eup %2576  ;;  %2600 = vpow2.f32 %v2113_v21  ;;  %v3354_v28 = vpop.f32.mrf.mxu0  ;;  %v1227_v0 = vmul.f32 %v2575_v32, %v3255_v10  ;;  %v1258_v57 = vmul.f32 %v1226_v61, %v3278_v33 }
 0x1b4   : > { %v2579_v3 = vpop.eup %2578  ;;  %2602 = vrcp.f32 %v1139_v55  ;;  %v1140_v42 = vadd.f32 1.0, %v2577_v37  ;;  %1564 = vmatprep.mubr.bf16.mxu0 %v1285_v36  ;;  %v2116_v47 = vmul.f32 -1.442695, %v3354_v28 }
 0x1b5   : > { %v2581_v44 = vpop.eup %2580  ;;  %v1228_v8 = vmul.f32 %v2579_v3, %v3260_v15  ;;  %2604 = vpow2.f32 %v2114_v31  ;;  %v3361_v52 = vpop.f32.mrf.mxu0  ;;  %1565 = vmatmul.mubr.bf16.gmra.mxu0 %v1284_v39  ;;  %v1259_v5 = vmul.f32 %v1227_v0, %v3283_v38 }
 0x1b6   : > { %v2583_v56 = vpop.eup %2582  ;;  %2606 = vrcp.f32 %v1140_v42  ;;  %v1141_v58 = vadd.f32 1.0, %v2581_v44  ;;  %v2117_v2 = vmul.f32 -1.442695, %v3361_v52  ;;  %v3381_v31 = vpop.f32.mrf.mxu1 }
 0x1b7   : > { %v1229_v6 = vmul.f32 %v2583_v56, %v3265_v20  ;;  %2608 = vpow2.f32 %v2115_v18  ;;  %v3366_v7 = vpop.f32.mrf.mxu0  ;;  %v1260_v15 = vmul.f32 %v1228_v8, %v3288_v43 }
 0x1b8   : > { %v2585_v10 = vpop.eup %2584  ;;  %2610 = vrcp.f32 %v1141_v58  ;;  %v2118_v11 = vmul.f32 -1.442695, %v3366_v7 }
 0x1b9   : > { %v2587_v62 = vpop.eup %2586  ;;  %v1261_v16 = vmul.f32 %v1229_v6, %v3293_v48  ;;  %2612 = vpow2.f32 %v2116_v47  ;;  %v3374_v17 = vpop.f32.mrf.mxu0  ;;  %v1286_v49 = vpack.c.bf16 %v1260_v15, %v1258_v57  ;;  %v1230_v39 = vmul.f32 %v2585_v10, %v3270_v25 }
 0x1ba   : > { %v2589_v20 = vpop.eup %2588  ;;  %v1142_v21 = vadd.f32 1.0, %v2587_v62  ;;  %2614 = vpow2.f32 %v2117_v2  ;;  %v2119_v51 = vmul.f32 -1.442695, %v3374_v17 }
 0x1bb   : > { %v2591_v43 = vpop.eup %2590  ;;  %v1287_v53 = vpack.c.bf16 %v1261_v16, %v1259_v5  ;;  %2616 = vpow2.f32 %v2118_v11  ;;  %v3378_v26 = vpop.f32.mrf.mxu0  ;;  %v1231_v55 = vmul.f32 %v2589_v20, %v3275_v30  ;;  %v1262_v58 = vmul.f32 %v1230_v39, %v3298_v60 }
 0x1bc   : > { %v2593_v27 = vpop.eup %2592  ;;  %2618 = vrcp.f32 %v1142_v21  ;;  %v1143_v38 = vadd.f32 1.0, %v2591_v43  ;;  %v2120_v48 = vmul.f32 -1.442695, %v3378_v26 }
 0x1bd   : > { %v2595_v32 = vpop.eup %2594  ;;  %v1232_v33 = vmul.f32 %v2593_v27, %v3280_v35  ;;  %2620 = vpow2.f32 %v2119_v51  ;;  %1574 = vmatprep.mubr.bf16.mxu0 %v1287_v53  ;;  %v3385_v36 = vpop.f32.mrf.mxu0  ;;  %v1263_v56 = vmul.f32 %v1231_v55, %v3305_v12 }
 0x1be   : > { %v2597_v37 = vpop.eup %2596  ;;  %2622 = vrcp.f32 %v1143_v38  ;;  %v1144_v18 = vadd.f32 1.0, %v2595_v32  ;;  %v2121_v3 = vmul.f32 -1.442695, %v3385_v36  ;;  %1575 = vmatmul.mubr.bf16.gmra.mxu0 %v1286_v49  ;;  %v3391_v35 = vpop.f32.mrf.mxu1 }
 0x1bf   : > { %v2599_v42 = vpop.eup %2598  ;;  %v1233_v44 = vmul.f32 %v2597_v37, %v3285_v40  ;;  %2624 = vpow2.f32 %v2120_v48  ;;  %v1264_v30 = vmul.f32 %v1232_v33, %v3312_v24 }
 0x1c0   : > { %v2601_v0 = vpop.eup %2600  ;;  %2626 = vrcp.f32 %v1144_v18  ;;  %v3398_v62 = vpop.f32.mrf.mxu1  ;;  %v1234_v12 = vmul.f32 %v2599_v42, %v3290_v45 }
 0x1c1   : > { %v2603_v8 = vpop.eup %2602  ;;  %v1145_v47 = vadd.f32 1.0, %v2601_v0  ;;  %v1265_v25 = vmul.f32 %v1233_v44, %v3319_v34  ;;  %2628 = vpow2.f32 %v2121_v3  ;;  %v1288_v11 = vpack.c.bf16 %v1264_v30, %v1262_v58 }
 0x1c2   : > { %v2605_v61 = vpop.eup %2604  ;;  %v1235_v10 = vmul.f32 %v2603_v8, %v3295_v54  ;;  %v1009_v53 = vpop.f32.mrf.mxu1  ;;  %v1266_v27 = vmul.f32 %v1234_v12, %v3326_v46 }
 0x1c3   : > { %v2607_v2 = vpop.eup %2606  ;;  %2630 = vrcp.f32 %v1145_v47  ;;  %v1289_v40 = vpack.c.bf16 %v1265_v25, %v1263_v56  ;;  %v1146_v15 = vadd.f32 1.0, %v2605_v61 }
 0x1c4   : > { %v2609_v6 = vpop.eup %2608  ;;  %v1236_v24 = vmul.f32 %v2607_v2, %v3300_v4  ;;  %v1267_v51 = vmul.f32 %v1235_v10, %v3333_v63  ;;  %v1011_v33 = vpop.f32.mrf.mxu1 }
 0x1c5   : > { %v2611_v5 = vpop.eup %2610  ;;  %v1147_v34 = vadd.f32 1.0, %v2609_v6  ;;  %1584 = vmatprep.mubr.bf16.mxu0 %v1289_v40 }
 0x1c6   : > { %v2613_v16 = vpop.eup %2612  ;;  %v1237_v60 = vmul.f32 %v2611_v5, %v3308_v19  ;;  %1585 = vmatmul.mubr.bf16.gmra.mxu0 %v1288_v11  ;;  %v1268_v54 = vmul.f32 %v1236_v24, %v3339_v59  ;;  %v1013_v44 = vpop.f32.mrf.mxu1 }
 0x1c7   : > { %v2615_v20 = vpop.eup %2614  ;;  %2632 = vrcp.f32 %v1147_v34  ;;  %v1148_v21 = vadd.f32 1.0, %v2613_v16 }
 0x1c8   : > { %v2617_v57 = vpop.eup %2616  ;;  %2634 = vrcp.f32 %v1146_v15  ;;  %v1149_v4 = vadd.f32 1.0, %v2615_v20  ;;  %v1269_v43 = vmul.f32 %v1237_v60, %v3347_v1  ;;  %v1290_v32 = vpack.c.bf16 %v1268_v54, %v1266_v27  ;;  %v1300_v27 = vld [vmem:[#allocation2 + $0xd8] sm:$0xff] }
 0x1c9   : > { %v2619_v45 = vpop.eup %2618  ;;  %2636 = vrcp.f32 %v1148_v21  ;;  %v1150_v59 = vadd.f32 1.0, %v2617_v57 }
 0x1ca   : > { %v2621_v38 = vpop.eup %2620  ;;  %2638 = vrcp.f32 %v1149_v4  ;;  %v1291_v19 = vpack.c.bf16 %v1269_v43, %v1267_v51  ;;  %v1238_v42 = vmul.f32 %v2619_v45, %v3315_v29 }
 0x1cb   : > { %v2623_v49 = vpop.eup %2622  ;;  %v1151_v48 = vadd.f32 1.0, %v2621_v38 }
 0x1cc   : > { %v2625_v55 = vpop.eup %2624  ;;  %1594 = vmatprep.mubr.bf16.mxu1 %v1291_v19  ;;  %v1239_v18 = vmul.f32 %v2623_v49, %v3323_v41  ;;  %v1017_v41 = vpop.f32.mrf.mxu1 }
 0x1cd   : > { %v2627_v37 = vpop.eup %2626  ;;  %2640 = vrcp.f32 %v1151_v48  ;;  %v1152_v63 = vadd.f32 1.0, %v2625_v55  ;;  %1595 = vmatmul.mubr.bf16.vlgmr.msra.gmra.mxu1 %v1290_v32  ;;  %v1302_v48 = vld [vmem:[#allocation2 + $0x50] sm:$0xff] }
 0x1ce   : > { %v2629_v1 = vpop.eup %2628  ;;  %v1240_v39 = vmul.f32 %v2627_v37, %v3328_v50  ;;  %v1271_v8 = vmul.f32 %v1239_v18, %v3370_v14  ;;  %v1270_v50 = vmul.f32 %v1238_v42, %v3356_v13  ;;  %v1019_v6 = vpop.f32.mrf.mxu1  ;;  %v1305_v18 = vld [vmem:[#allocation2 + $0x48] sm:$0xff] }
 0x1cf   : > { %2642 = vrcp.f32 %v1152_v63  ;;  %v1153_v46 = vadd.f32 1.0, %v2629_v1  ;;  %v1304_v63 = vld [vmem:[#allocation2 + $0x30] sm:$0xff] }
 0x1d0   : > { %v2631_v3 = vpop.eup %2630  ;;  %2644 = vrcp.f32 %v1150_v59  ;;  %v1272_v30 = vmul.f32 %v1240_v39, %v3381_v31  ;;  %v1303_v59 = vld [vmem:[#allocation2 + $0x68] sm:$0xff] }
 0x1d1   : > { %v1241_v0 = vmul.f32 %v2631_v3, %v3336_v9  ;;  %2646 = vrcp.f32 %v1153_v46 }
 0x1d2   : > { %v1292_v2 = vpack.c.bf16 %v1272_v30, %v1270_v50  ;;  %v1307_v30 = vld [vmem:[#allocation2 + $0x88] sm:$0xff] }
 0x1d3   : > { %v1273_v47 = vmul.f32 %v1241_v0, %v3391_v35 }
 0x1d4   : > { %v2633_v56 = vpop.eup %2632 }
 0x1d5   : > { %v2635_v25 = vpop.eup %2634  ;;  %v1293_v61 = vpack.c.bf16 %v1273_v47, %v1271_v8  ;;  %v1243_v29 = vmul.f32 %v2633_v56, %v3351_v23  ;;  %v1021_v23 = vpop.f32.mrf.mxu1  ;;  %v1308_v56 = vld [vmem:[#allocation2 + $0xe8] sm:$0xff] }
 0x1d6   : > { %v2637_v58 = vpop.eup %2636  ;;  %v1242_v31 = vmul.f32 %v2635_v25, %v3343_v22  ;;  %v1309_v25 = vld [vmem:[#allocation2 + $0xb8] sm:$0xff] }
 0x1d7   : > { %v2639_v40 = vpop.eup %2638  ;;  %v1244_v9 = vmul.f32 %v2637_v58, %v3354_v28  ;;  %1604 = vmatprep.mubr.bf16.mxu1 %v1293_v61  ;;  %v1275_v10 = vmul.f32 %v1243_v29, %v1009_v53  ;;  %v1023_v20 = vpop.f32.mrf.mxu1  ;;  %v1299_v53 = vld [vmem:[#allocation2] sm:$0xff] }
 0x1d8   : > { %v1245_v14 = vmul.f32 %v2639_v40, %v3361_v52  ;;  %1605 = vmatmul.mubr.bf16.gmra.mxu1 %v1292_v2  ;;  %v1274_v11 = vmul.f32 %v1242_v31, %v3398_v62  ;;  %v1310_v29 = vld [vmem:[#allocation2 + $0x60] sm:$0xff] }
 0x1d9   : > { %v1276_v13 = vmul.f32 %v1244_v9, %v1011_v33  ;;  %v1311_v9 = vld [vmem:[#allocation2 + $0xf0] sm:$0xff] }
 0x1da   : > { %v2641_v35 = vpop.eup %2640  ;;  %v1277_v24 = vmul.f32 %v1245_v14, %v1013_v44  ;;  %v1306_v44 = vld [vmem:[#allocation2 + $0x80] sm:$0xff] }
 0x1db   : > { %v1247_v34 = vmul.f32 %v2641_v35, %v3374_v17  ;;  %v1294_v22 = vpack.c.bf16 %v1276_v13, %v1274_v11  ;;  %v1298_v17 = vld [vmem:[#allocation2 + $0xb0] sm:$0xff]  ;;  %v1313_v13 = vld [vmem:[#allocation2 + $0x78] sm:$0xff] }
 0x1dc   : > { %v2643_v15 = vpop.eup %2642  ;;  %v1295_v5 = vpack.c.bf16 %v1277_v24, %v1275_v10 }
 0x1dd   : > { %v2645_v12 = vpop.eup %2644  ;;  %v1248_v16 = vmul.f32 %v2643_v15, %v3378_v26  ;;  %v1279_v21 = vmul.f32 %v1247_v34, %v1019_v6  ;;  %v1312_v6 = vld [vmem:[#allocation2 + $0x8] sm:$0xff]  ;;  %v1314_v15 = vld [vmem:[#allocation2 + $0x38] sm:$0xff] }
 0x1de   : > { %v2647_v28 = vpop.eup %2646  ;;  %1614 = vmatprep.mubr.bf16.mxu1 %v1295_v5  ;;  %v1246_v60 = vmul.f32 %v2645_v12, %v3366_v7  ;;  %v1301_v7 = vld [vmem:[#allocation2 + $0x18] sm:$0xff] }
 0x1df   : > { %v1249_v52 = vmul.f32 %v2647_v28, %v3385_v36  ;;  %v1280_v57 = vmul.f32 %v1248_v16, %v1021_v23  ;;  %v1315_v12 = vld [vmem:[#allocation2 + $0x58] sm:$0xff]  ;;  %v1316_v16 = vld [vmem:[#allocation2 + $0x40] sm:$0xff] }
 0x1e0   : > { %1615 = vmatmul.mubr.bf16.gmra.mxu1 %v1294_v22  ;;  %v1278_v4 = vmul.f32 %v1246_v60, %v1017_v41  ;;  %v1317_v60 = vld [vmem:[#allocation2 + $0xc8] sm:$0xff] }
 0x1e1   : > { %v1281_v54 = vmul.f32 %v1249_v52, %v1023_v20 }
 0x1e2   : > { %v1296_v51 = vpack.c.bf16 %v1280_v57, %v1278_v4  ;;  %v1318_v57 = vld [vmem:[#allocation2 + $0xe0] sm:$0xff]  ;;  %v1319_v4 = vld [vmem:[#allocation2 + $0x90] sm:$0xff] }
 0x1e3   : > { %v1297_v62 = vpack.c.bf16 %v1281_v54, %v1279_v21 }
 0x1e5   : > { %1624 = vmatprep.mubr.bf16.mxu1 %v1297_v62 }
 0x1e8   : > { %1625 = vmatmul.mubr.bf16.gmra.mxu1 %v1296_v51 }
 0x26d   : > { %v1556_v43 = vpop.f32.mrf.mxu0 }
 0x26e   : > { %v1635_v26 = vadd.f32 %v1556_v43, %v1298_v17  ;;  %v1320_v43 = vld [vmem:[#allocation2 + $0x70] sm:$0xff] }
 0x26f   : > { %v1558_v45 = vpop.f32.mrf.mxu0 }
 0x270   : > { %1667 = vst [vmem:[#allocation2 + $0xb0] sm:$0xff] %v1635_v26  ;;  %v1636_v36 = vadd.f32 %v1558_v45, %v1299_v53  ;;  %v1321_v45 = vld [vmem:[#allocation2 + $0xc0] sm:$0xff] }
 0x271   : > { %v1560_v38 = vpop.f32.mrf.mxu0 }
 0x272   : > { %1668 = vst [vmem:[#allocation2] sm:$0xff] %v1636_v36  ;;  %v1637_v19 = vadd.f32 %v1560_v38, %v1300_v27  ;;  %v1322_v38 = vld [vmem:[#allocation2 + $0xa8] sm:$0xff] }
 0x273   : > { %v1562_v49 = vpop.f32.mrf.mxu0 }
 0x274   : > { %1669 = vst [vmem:[#allocation2 + $0xd8] sm:$0xff] %v1637_v19  ;;  %v1638_v32 = vadd.f32 %v1562_v49, %v1301_v7  ;;  %v1323_v49 = vld [vmem:[#allocation2 + $0xd0] sm:$0xff] }
 0x275   : > { %v1566_v55 = vpop.f32.mrf.mxu0 }
 0x276   : > { %1670 = vst [vmem:[#allocation2 + $0x18] sm:$0xff] %v1638_v32  ;;  %v1639_v33 = vadd.f32 %v1566_v55, %v1302_v48  ;;  %v1324_v55 = vld [vmem:[#allocation2 + $0x10] sm:$0xff] }
 0x277   : > { %v1568_v37 = vpop.f32.mrf.mxu0 }
 0x278   : > { %1671 = vst [vmem:[#allocation2 + $0x50] sm:$0xff] %v1639_v33  ;;  %v1640_v1 = vadd.f32 %v1568_v37, %v1303_v59  ;;  %v1325_v37 = vld [vmem:[#allocation2 + $0x28] sm:$0xff] }
 0x279   : > { %v1570_v39 = vpop.f32.mrf.mxu0 }
 0x27a   : > { %1672 = vst [vmem:[#allocation2 + $0x68] sm:$0xff] %v1640_v1  ;;  %v1641_v46 = vadd.f32 %v1570_v39, %v1304_v63  ;;  %v1326_v39 = vld [vmem:[#allocation2 + $0xa0] sm:$0xff] }
 0x27b   : > { %v1572_v3 = vpop.f32.mrf.mxu0 }
 0x27c   : > { %1673 = vst [vmem:[#allocation2 + $0x30] sm:$0xff] %v1641_v46  ;;  %v1642_v42 = vadd.f32 %v1572_v3, %v1305_v18  ;;  %v1327_v3 = vld [vmem:[#allocation2 + $0xf8] sm:$0xff] }
 0x27e   : > { %1674 = vst [vmem:[#allocation2 + $0x48] sm:$0xff] %v1642_v42  ;;  %v1576_v0 = vpop.f32.mrf.mxu0 }
 0x27f   : > { %v1643_v8 = vadd.f32 %v1576_v0, %v1306_v44  ;;  %v1328_v0 = vld [vmem:[#allocation2 + $0x20] sm:$0xff] }
 0x280   : > { %v1578_v47 = vpop.f32.mrf.mxu0 }
 0x281   : > { %1675 = vst [vmem:[#allocation2 + $0x80] sm:$0xff] %v1643_v8  ;;  %v1644_v50 = vadd.f32 %v1578_v47, %v1307_v30  ;;  %v1329_v47 = vld [vmem:[#allocation2 + $0x98] sm:$0xff] }
 0x282   : > { %v1580_v41 = vpop.f32.mrf.mxu0 }
 0x283   : > { %1676 = vst [vmem:[#allocation2 + $0x88] sm:$0xff] %v1644_v50  ;;  %v1645_v61 = vadd.f32 %v1580_v41, %v1308_v56 }
 0x284   : > { %v1582_v58 = vpop.f32.mrf.mxu0 }
 0x285   : > { %1677 = vst [vmem:[#allocation2 + $0xe8] sm:$0xff] %v1645_v61  ;;  %v1646_v2 = vadd.f32 %v1582_v58, %v1309_v25 }
 0x286   : > { %v1586_v40 = vpop.f32.mrf.mxu0 }
 0x287   : > { %1678 = vst [vmem:[#allocation2 + $0xb8] sm:$0xff] %v1646_v2  ;;  %v1647_v31 = vadd.f32 %v1586_v40, %v1310_v29 }
 0x288   : > { %v1588_v14 = vpop.f32.mrf.mxu0 }
 0x289   : > { %1679 = vst [vmem:[#allocation2 + $0x60] sm:$0xff] %v1647_v31  ;;  %v1648_v35 = vadd.f32 %v1588_v14, %v1311_v9 }
 0x28a   : > { %v1590_v10 = vpop.f32.mrf.mxu0 }
 0x28b   : > { %1680 = vst [vmem:[#allocation2 + $0xf0] sm:$0xff] %v1648_v35  ;;  %v1649_v24 = vadd.f32 %v1590_v10, %v1312_v6 }
 0x28c   : > { %v1592_v11 = vpop.f32.mrf.mxu0 }
 0x28d   : > { %1681 = vst [vmem:[#allocation2 + $0x8] sm:$0xff] %v1649_v24  ;;  %v1650_v5 = vadd.f32 %v1592_v11, %v1313_v13  ;;  %v1596_v23 = vpop.f32.mrf.mxu1 }
 0x28e   : > { %v1651_v34 = vadd.f32 %v1596_v23, %v1314_v15 }
 0x28f   : > { %1682 = vst [vmem:[#allocation2 + $0x78] sm:$0xff] %v1650_v5  ;;  %v1598_v28 = vpop.f32.mrf.mxu1 }
 0x290   : > { %1683 = vst [vmem:[#allocation2 + $0x38] sm:$0xff] %v1651_v34  ;;  %v1652_v22 = vadd.f32 %v1598_v28, %v1315_v12 }
 0x291   : > { %v1600_v52 = vpop.f32.mrf.mxu1 }
 0x292   : > { %1684 = vst [vmem:[#allocation2 + $0x58] sm:$0xff] %v1652_v22  ;;  %v1653_v20 = vadd.f32 %v1600_v52, %v1316_v16 }
 0x293   : > { %v1602_v21 = vpop.f32.mrf.mxu1 }
 0x294   : > { %1685 = vst [vmem:[#allocation2 + $0x40] sm:$0xff] %v1653_v20  ;;  %v1654_v54 = vadd.f32 %v1602_v21, %v1317_v60 }
 0x296   : > { %1686 = vst [vmem:[#allocation2 + $0xc8] sm:$0xff] %v1654_v54 }
 0x298   : > { %v1606_v62 = vpop.f32.mrf.mxu1 }
 0x299   : > { %v1655_v51 = vadd.f32 %v1606_v62, %v1318_v57 }
 0x29a   : > { %v1608_v17 = vpop.f32.mrf.mxu1 }
 0x29b   : > { %1687 = vst [vmem:[#allocation2 + $0xe0] sm:$0xff] %v1655_v51  ;;  %v1656_v53 = vadd.f32 %v1608_v17, %v1319_v4 }
 0x29c   : > { %v1610_v26 = vpop.f32.mrf.mxu1 }
 0x29d   : > { %1688 = vst [vmem:[#allocation2 + $0x90] sm:$0xff] %v1656_v53  ;;  %v1657_v27 = vadd.f32 %v1610_v26, %v1320_v43 }
 0x29e   : > { %v1612_v36 = vpop.f32.mrf.mxu1 }
 0x29f   : > { %1689 = vst [vmem:[#allocation2 + $0x70] sm:$0xff] %v1657_v27  ;;  %v1658_v7 = vadd.f32 %v1612_v36, %v1321_v45 }
 0x2a0   : > { %v1616_v19 = vpop.f32.mrf.mxu1 }
 0x2a1   : > { %1690 = vst [vmem:[#allocation2 + $0xc0] sm:$0xff] %v1658_v7  ;;  %v1659_v48 = vadd.f32 %v1616_v19, %v1322_v38 }
 0x2a2   : > { %v1618_v32 = vpop.f32.mrf.mxu1 }
 0x2a3   : > { %1691 = vst [vmem:[#allocation2 + $0xa8] sm:$0xff] %v1659_v48  ;;  %v1660_v59 = vadd.f32 %v1618_v32, %v1323_v49 }
 0x2a4   : > { %v1620_v33 = vpop.f32.mrf.mxu1 }
 0x2a5   : > { %1692 = vst [vmem:[#allocation2 + $0xd0] sm:$0xff] %v1660_v59  ;;  %v1661_v63 = vadd.f32 %v1620_v33, %v1324_v55 }
 0x2a6   : > { %v1622_v1 = vpop.f32.mrf.mxu1 }
 0x2a7   : > { %1693 = vst [vmem:[#allocation2 + $0x10] sm:$0xff] %v1661_v63  ;;  %v1662_v18 = vadd.f32 %v1622_v1, %v1325_v37 }
 0x2a8   : > { %v1626_v46 = vpop.f32.mrf.mxu1 }
 0x2a9   : > { %1694 = vst [vmem:[#allocation2 + $0x28] sm:$0xff] %v1662_v18  ;;  %v1663_v42 = vadd.f32 %v1626_v46, %v1326_v39 }
 0x2aa   : > { %v1628_v44 = vpop.f32.mrf.mxu1 }
 0x2ab   : > { %1695 = vst [vmem:[#allocation2 + $0xa0] sm:$0xff] %v1663_v42  ;;  %v1664_v30 = vadd.f32 %v1628_v44, %v1327_v3 }
 0x2ac   : > { %v1630_v8 = vpop.f32.mrf.mxu1 }
 0x2ad   : > { %1696 = vst [vmem:[#allocation2 + $0xf8] sm:$0xff] %v1664_v30  ;;  %v1665_v56 = vadd.f32 %v1630_v8, %v1328_v0  ;;  %1702 = sbr.rel (%p2154_p11) target bundleno = 705 (0x2c1), region = 52 }
 0x2ae   : > { %v1632_v50 = vpop.f32.mrf.mxu1 }
 0x2af   : > { %1697 = vst [vmem:[#allocation2 + $0x20] sm:$0xff] %v1665_v56  ;;  %v1666_v41 = vadd.f32 %v1632_v50, %v1329_v47 }
 0x2b1   : > { %1698 = vst [vmem:[#allocation2 + $0x98] sm:$0xff] %v1666_v41 }
 0x2b2   : > { %v1703_v25 = vld [vmem:[#allocation2 + $0xb0] sm:$0xff]  ;;  %v1704_v61 = vld [vmem:[#allocation2] sm:$0xff]  ;;  %v1705_v58 = vld [vmem:[#allocation2 + $0xd8] sm:$0xff] }
 0x2b3   : > { %v2182_v29 = vpack.c.bf16 %v1704_v61, %v1703_v25  ;;  %v1706_v2 = vld [vmem:[#allocation2 + $0x18] sm:$0xff]  ;;  %v1707_v40 = vld [vmem:[#allocation2 + $0x50] sm:$0xff]  ;;  %v1708_v9 = vld [vmem:[#allocation2 + $0x68] sm:$0xff] }
 0x2b4   : > { %v2183_v31 = vpack.c.bf16 %v1706_v2, %v1705_v58  ;;  %v2184_v14 = vpack.c.bf16 %v1708_v9, %v1707_v40  ;;  %v1709_v6 = vld [vmem:[#allocation2 + $0x30] sm:$0xff]  ;;  %v1710_v35 = vld [vmem:[#allocation2 + $0x48] sm:$0xff]  ;;  %v1711_v10 = vld [vmem:[#allocation2 + $0x80] sm:$0xff] }
 0x2b5   : > { %1831 = vst [vmem:[%s3105_s7] sm:$0xff] %v2182_v29  ;;  %v2185_v13 = vpack.c.bf16 %v1710_v35, %v1709_v6  ;;  %v1712_v24 = vld [vmem:[#allocation2 + $0x88] sm:$0xff]  ;;  %v1714_v11 = vld [vmem:[#allocation2 + $0xb8] sm:$0xff]  ;;  %v1715_v12 = vld [vmem:[#allocation2 + $0x60] sm:$0xff] }
 0x2b6   : > { %v1713_v15 = vld [vmem:[#allocation2 + $0xe8] sm:$0xff]  ;;  %1832 = vst [vmem:[%s3105_s7 + $0x8] sm:$0xff] %v2183_v31  ;;  %1833 = vst [vmem:[%s3105_s7 + $0x10] sm:$0xff] %v2184_v14  ;;  %v2186_v5 = vpack.c.bf16 %v1712_v24, %v1711_v10  ;;  %v1716_v34 = vld [vmem:[#allocation2 + $0xf0] sm:$0xff] }
 0x2b7   : > { %v2187_v23 = vpack.c.bf16 %v1714_v11, %v1713_v15  ;;  %v1717_v28 = vld [vmem:[#allocation2 + $0x8] sm:$0xff]  ;;  %1834 = vst [vmem:[%s3105_s7 + $0x18] sm:$0xff] %v2185_v13  ;;  %v2188_v16 = vpack.c.bf16 %v1716_v34, %v1715_v12  ;;  %v1718_v22 = vld [vmem:[#allocation2 + $0x78] sm:$0xff]  ;;  %v1721_v54 = vld [vmem:[#allocation2 + $0x40] sm:$0xff] }
 0x2b8   : > { %v1719_v52 = vld [vmem:[#allocation2 + $0x38] sm:$0xff]  ;;  %1835 = vst [vmem:[%s3105_s7 + $0x20] sm:$0xff] %v2186_v5  ;;  %v2189_v20 = vpack.c.bf16 %v1718_v22, %v1717_v28  ;;  %v1722_v57 = vld [vmem:[#allocation2 + $0xc8] sm:$0xff]  ;;  %v1723_v62 = vld [vmem:[#allocation2 + $0xe0] sm:$0xff] }
 0x2b9   : > { %v1720_v60 = vld [vmem:[#allocation2 + $0x58] sm:$0xff]  ;;  %1836 = vst [vmem:[%s3105_s7 + $0x28] sm:$0xff] %v2187_v23  ;;  %1837 = vst [vmem:[%s3105_s7 + $0x30] sm:$0xff] %v2188_v16  ;;  %v2191_v4 = vpack.c.bf16 %v1722_v57, %v1721_v54  ;;  %v1724_v51 = vld [vmem:[#allocation2 + $0x90] sm:$0xff] }
 0x2ba   : > { %v2190_v21 = vpack.c.bf16 %v1720_v60, %v1719_v52  ;;  %v1725_v17 = vld [vmem:[#allocation2 + $0x70] sm:$0xff]  ;;  %v1726_v43 = vld [vmem:[#allocation2 + $0xc0] sm:$0xff]  ;;  %1838 = vst [vmem:[%s3105_s7 + $0x38] sm:$0xff] %v2189_v20  ;;  %v2192_v53 = vpack.c.bf16 %v1724_v51, %v1723_v62  ;;  %v1727_v45 = vld [vmem:[#allocation2 + $0xa8] sm:$0xff] }
 0x2bb   : > { %v2193_v26 = vpack.c.bf16 %v1726_v43, %v1725_v17  ;;  %v1728_v27 = vld [vmem:[#allocation2 + $0xd0] sm:$0xff]  ;;  %1840 = vst [vmem:[%s3105_s7 + $0x48] sm:$0xff] %v2191_v4  ;;  %v1730_v7 = vld [vmem:[#allocation2 + $0x28] sm:$0xff]  ;;  %v1731_v19 = vld [vmem:[#allocation2 + $0xa0] sm:$0xff] }
 0x2bc   : > { %1839 = vst [vmem:[%s3105_s7 + $0x40] sm:$0xff] %v2190_v21  ;;  %v1729_v36 = vld [vmem:[#allocation2 + $0x10] sm:$0xff]  ;;  %v2194_v38 = vpack.c.bf16 %v1728_v27, %v1727_v45  ;;  %v1732_v49 = vld [vmem:[#allocation2 + $0xf8] sm:$0xff]  ;;  %1841 = vst [vmem:[%s3105_s7 + $0x50] sm:$0xff] %v2192_v53 }
 0x2bd   : > { %1842 = vst [vmem:[%s3105_s7 + $0x58] sm:$0xff] %v2193_v26  ;;  %v2195_v48 = vpack.c.bf16 %v1730_v7, %v1729_v36  ;;  %v2196_v32 = vpack.c.bf16 %v1732_v49, %v1731_v19  ;;  %v1733_v55 = vld [vmem:[#allocation2 + $0x20] sm:$0xff]  ;;  %v1734_v59 = vld [vmem:[#allocation2 + $0x98] sm:$0xff] }
 0x2be   : > { %1843 = vst [vmem:[%s3105_s7 + $0x60] sm:$0xff] %v2194_v38  ;;  %v2197_v33 = vpack.c.bf16 %v1734_v59, %v1733_v55 }
 0x2bf   : > { %1844 = vst [vmem:[%s3105_s7 + $0x68] sm:$0xff] %v2195_v48  ;;  %1845 = vst [vmem:[%s3105_s7 + $0x70] sm:$0xff] %v2196_v32 }
 0x2c0   : > { %1846 = vst [vmem:[%s3105_s7 + $0x78] sm:$0xff] %v2197_v33 }
 0x2c1 PF: > { %s2199_s25 = sshll.u32 %s2844_s19, 11  ;;  %s3552_s6 = sld [smem:[#allocation24_spill]] }
 0x2c2   : > { %s1862_s26 = sshll.u32 %s3105_s7, 4  ;;  %s1848_s5 = scalar_lea.sflag [#allocation5], %s3085_s1  ;;  %s3447_s26 = int_to_ptr.vmem [resolvable:$true] %s1862_s26 }
 0x2c3   : > { %s2732_s3 = scalar_lea.vmem %s3447_s26, 2048  ;;  %s2867_s28 = smov [#allocation9]  }
 0x2c4   : > { %p2733_p1 = scmp.ne.s32.totalorder %s3447_s26, %s2732_s3  ;;  %s2736_s17 = sshll.u32 %s2867_s28, 4  ;;  %s2737_s17 = int_to_ptr.vmem [resolvable:$false] %s2736_s17 }
 0x2c5   : > { %s2738_s19 = scalar_lea.vmem %s2737_s17, 4096  ;;  %p2739_p9 = scmp.lt.s32.totalorder %s3447_s26, %s2737_s17 }
 0x2c6   : > { %p2734_p10 = pnand %p2733_p1, %p3039_p0  ;;  %p2740_p13 = scmp.lt.s32.totalorder %s2738_s19, %s2732_s3 }
 0x2c7   : > { %s3444_s12 = scalar_lea.hbm %s3552_s6, %s2199_s25 }
 0x2c8   : > { %p2735_p3 = pneg %p2734_p10  ;;  %p2741_p5 = por %p2740_p13, %p2739_p9 }
 0x2ca   : > { %p2742_p2 = pnand %p2741_p5, %p2735_p3 }
 0x2cc   : > { %2745 = shalt.err (!%p2742_p2)
}
 0x2cd   : > { %s2746_s29 = scalar_lea.hbm %s3444_s12, 2048  ;;  %s2750_s27 = scalar_lea.hbm %s3552_s6, 4096 }
 0x2ce   : > { %p2747_p6 = scmp.ne.s32.totalorder %s3444_s12, %s2746_s29  ;;  %p2751_p8 = scmp.lt.s32.totalorder %s3444_s12, %s3552_s6 }
 0x2cf   : > { %p2752_p7 = scmp.lt.s32.totalorder %s2750_s27, %s2746_s29 }
 0x2d0   : > { %p2748_p12 = pnand %p2747_p6, %p3039_p0 }
 0x2d1   : > { %p2753_p11 = por %p2752_p7, %p2751_p8 }
 0x2d2   : > { %p2749_p4 = pneg %p2748_p12 }
 0x2d4   : > { %p2754_p1 = pnand %p2753_p11, %p2749_p4 }
 0x2d6   : > { %2757 = shalt.err (!%p2754_p1)
}
 0x2d7   : > { %s2868_s23 = smov 128   ;;  %s2869_s10 = smov 8  }
 0x2d8   : > { %2238 = dma.vmem_to_hbm [thread:$0]  (%p3039_p0), %s3447_s26, 2048, %s3444_s12, %s1848_s5, %s2868_s23, %s2868_s23, %s2869_s10  }
 0x2d9 PF: > { %s3553_s11 = sld [smem:[#allocation21_spill]]  ;;  %p2255_p10 = scmp.ge.s32.totalorder %s2856_s22, 2 }
 0x2da   : > { %s1877_s8 = sand.u32 1, %s2828_s15  }
 0x2db   : > { %s1878_s4 = scalar_lea.sflag [#allocation5], %s1877_s8 }
 0x2df   : > { %p3554_p3 = scmp.ne.s32.totalorder %s3553_s11, 0 }
 0x2e1   : > { %p2251_p9 = pnand %p2255_p10, %p3554_p3 }
 0x2e3   : > { %p2252_p13 = pneg %p2251_p9 }
 0x2e5   : > { %2811 = dma.done.wait (%p2252_p13), %s1878_s4, 2048  }
 0x2e6   : > { %2813 = vsyncadd (%p2252_p13), %s1878_s4, 4294965248  ;;  %s22_s22 = sadd.s32 1, %s2856_s22   ;;  %s3555_s7 = sld [smem:[#allocation13_spill]] }
 0x2e7   : > { %p19_p5 = scmp.ge.s32.totalorder %s22_s22, 6   ;;  %s3556_s14 = sld [smem:[#allocation17_spill]] }
 0x2e8   : > { %s3557_s1 = sld [smem:[#allocation14_spill]]  ;;  %s3562_s12 = smov %s2820_s13 }
 0x2e9   : > { %s3558_s17 = sld [smem:[#allocation20_spill]]  ;;  %s3564_s15 = smov %s2832_s16 }
 0x2ea   : > { %s3559_s19 = sld [smem:[#allocation15_spill]]  ;;  %s3566_s18 = smov %s2848_s20 }
 0x2eb   : > { %s3560_s25 = sld [smem:[#allocation16_spill]] }
 0x2ec   : > { %s3561_s21 = sld [smem:[#allocation18_spill]]  ;;  %s3563_s13 = smov %s3555_s7 }
 0x2ed   :  { %21 = sbr.rel (!%p19_p5) target bundleno = 15 (0xf), region = 109 }
 0x2ee   : > { %s3565_s16 = smov %s3557_s1 }
 0x2f1   : > { %s3567_s20 = smov %s3560_s25 }
 0x2f2   :  { %1883 = vsyncpa [#allocation4], 1 }
 0x2f3   :  { %1885 = vsyncpa [#allocation4 + $0x1], 1 }
 0x2f4   :  { %1886 = vsyncpa [#allocation7], 1 }
 0x2f5   :  { %1888 = vsyncpa [#allocation7 + $0x1], 1 }
 0x2f6   :  { %1889 = vsyncpa [#allocation5], 1 }
 0x2f7   :  { %1891 = vsyncpa [#allocation5 + $0x1], 1 }

</bundles_post_ra>
